<compile_context>
chip_gen: v7x
topology: tpu7x:2x2x1
jax: 0.10.0
libtpu: 0.0.40
codegen_flags: <defaults>
</compile_context>

<pallas_src>
import jax
import jax.numpy as jnp
import numpy as np
from jax.experimental import pallas as pl
from jax.experimental.pallas import tpu as pltpu


def _make_kernel(num_splits, group_width, dilations, H, W, TR, out_dtype):
    gw = group_width
    L = H * W

    def shift_flat(a, m):
        # out[..., p] = a[..., p + m] if 0 <= p + m < L else 0     (m is a static Python int)
        if m == 0:
            return a
        if abs(m) >= L:
            return jnp.zeros_like(a)
        zeros = jnp.zeros(a.shape[:-1] + (abs(m),), a.dtype)
        if m > 0:
            return jnp.concatenate([a[..., m:], zeros], axis=-1)
        return jnp.concatenate([zeros, a[..., : L + m]], axis=-1)

    def kernel(x_ref, w_ref, b_ref, o_ref):
        # x_ref: (1, gw, TR, L)        this split / row-tile, rows = (batch x groups)
        # w_ref: (1, gw*gw*9, TR, 1)   f32 per-row weight columns, widx = (j*gw+ci)*9 + kh*3+kw
        # b_ref: (1, gw, TR, 1)        f32 per-row bias columns
        # o_ref: (1, gw, TR, L)
        x = x_ref[0].astype(jnp.float32)                       # one load + cast per grid step
        lane = jax.lax.broadcasted_iota(jnp.int32, (1, 1, L), 2)
        colpos = lane % W                                      # lane's column within its H-row

        for s_idx in range(num_splits):
            d = int(dilations[s_idx])

            @pl.when(pl.program_id(0) == s_idx)
            def _(d=d):
                # 3 column-shifted copies of the whole (gw, TR, L) block (kw = 0, 1, 2).
                cols = []
                for kw in range(3):
                    dw = (kw - 1) * d
                    a = shift_flat(x, dw)
                    if dw != 0:
                        valid = (colpos + dw >= 0) & (colpos + dw < W)
                        a = jnp.where(valid, a, 0.0)
                    cols.append(a)

                accs = [jnp.zeros((TR, L), jnp.float32) for _ in range(gw)]
                for kh in range(3):
                    dh = (kh - 1) * d
                    for kw in range(3):
                        # Row shift is a flat shift by dh*W; zero fill handles the H boundary.
                        tap = shift_flat(cols[kw], dh * W)     # (gw, TR, L)
                        for ci in range(gw):
                            t_ci = tap[ci]                     # (TR, L)
                            for j in range(gw):
                                widx = (j * gw + ci) * 9 + kh * 3 + kw
                                accs[j] = accs[j] + t_ci * w_ref[0, widx]

                for j in range(gw):
                    o_ref[0, j] = (accs[j] + b_ref[0, j]).astype(out_dtype)

    return kernel


def _pick_row_tile(R, gw, L, itemsize, budget=2 * 1024 * 1024):
    """Largest row tile (multiple of 8 dividing R, or R itself) with block <= budget bytes."""
    if gw * R * L * itemsize <= budget or R % 8 != 0:
        return R
    cands = [t for t in range(8, R + 1, 8) if R % t == 0]
    fitting = [t for t in cands if gw * t * L * itemsize <= budget]
    return max(fitting) if fitting else min(cands)


def dilated_conv_pallas(x, weights, biases, dilations, group_width, stride=1):
    """Equivalent of DilatedConv.forward (stride=1).

    x       : (N, C, H, W), NCHW
    weights : list (len == len(dilations)) of (C//num_splits, group_width, 3, 3) OIHW arrays
    biases  : list of (C//num_splits,) arrays, or None
    """
    assert stride == 1
    N, C, H, W = x.shape
    ns = len(dilations)
    assert C % ns == 0
    cc = C // ns
    gw = group_width
    assert cc % gw == 0
    groups = cc // gw
    R = N * groups
    L = H * W

    # ---- lane-dense layout (wrapper-side layout plumbing) -------------------------------
    # x[n, s*cc + g*gw + ci, h, w] -> x_r[s, ci, n*groups + g, h*W + w]
    x_r = (x.reshape(N, ns, groups, gw, L)
             .transpose(1, 3, 0, 2, 4)
             .reshape(ns, gw, R, L))

    # weights[s]: (cc, gw, 3, 3) OIHW, out channel o = g*gw + j
    w_all = jnp.stack([w.astype(jnp.float32) for w in weights], 0).reshape(ns, groups, gw, gw, 9)
    w_r = (w_all.transpose(0, 2, 3, 4, 1)                      # (s, j, ci, t, g)
                 .reshape(ns, gw * gw * 9, 1, groups))
    w_r = jnp.broadcast_to(w_r, (ns, gw * gw * 9, N, groups)).reshape(ns, gw * gw * 9, R, 1)

    if biases is not None:
        b_all = jnp.stack([b.astype(jnp.float32) for b in biases], 0)   # (ns, cc)
    else:
        b_all = jnp.zeros((ns, cc), jnp.float32)
    b_r = (b_all.reshape(ns, groups, gw).transpose(0, 2, 1).reshape(ns, gw, 1, groups))
    b_r = jnp.broadcast_to(b_r, (ns, gw, N, groups)).reshape(ns, gw, R, 1)

    # ---- row tiling: biggest tile under a ~2 MiB/buffer budget (full R at demo shapes) ---
    TR = _pick_row_tile(R, gw, L, x.dtype.itemsize)
    assert R % TR == 0

    kernel = _make_kernel(ns, gw, tuple(int(d) for d in dilations), H, W, TR, x.dtype)

    # Explicit VMEM budget (v7x: 64 MiB physical, 32 MiB scoped default).
    blk = 2 * gw * TR * L * x.dtype.itemsize                    # in + out blocks
    blk += (gw * gw * 9 + gw) * max(TR, 8) * 128 * 4            # padded weight/bias blocks
    vmem_limit = int(min(96 * 1024 * 1024, max(16 * 1024 * 1024, 4 * blk)))

    out_r = pl.pallas_call(
        kernel,
        out_shape=jax.ShapeDtypeStruct((ns, gw, R, L), x.dtype),
        grid=(ns, R // TR),
        in_specs=[
            pl.BlockSpec((1, gw, TR, L), lambda s, r: (s, 0, r, 0)),
            pl.BlockSpec((1, gw * gw * 9, TR, 1), lambda s, r: (s, 0, r, 0)),
            pl.BlockSpec((1, gw, TR, 1), lambda s, r: (s, 0, r, 0)),
        ],
        out_specs=pl.BlockSpec((1, gw, TR, L), lambda s, r: (s, 0, r, 0)),
        compiler_params=pltpu.CompilerParams(
            dimension_semantics=("parallel", "parallel"),
            vmem_limit_bytes=vmem_limit,
        ),
    )(x_r, w_r, b_r)

    # back to NCHW: out_r[s, j, n*groups+g, h*W+w] -> out[n, s*cc + g*gw + j, h, w]
    out = (out_r.reshape(ns, gw, N, groups, H, W)
                 .transpose(2, 0, 3, 1, 4, 5)
                 .reshape(N, C, H, W))
    return out


if __name__ == "__main__":
    # Module config: input_channel=8, dilations=[1, 2], group_width=2, stride=1, bias=True
    N, C, H, W = 2, 8, 16, 16
    dilations = [1, 2]
    group_width = 2
    stride = 1
    ns = len(dilations)
    cc = C // ns
    groups = cc // group_width

    key = jax.random.PRNGKey(0)
    kx, *kws = jax.random.split(key, 1 + 2 * ns)
    x = jax.random.normal(kx, (N, C, H, W), jnp.float32)
    weights = [
        jax.random.normal(kws[2 * i], (cc, group_width, 3, 3), jnp.float32) * 0.1
        for i in range(ns)
    ]
    biases = [
        jax.random.normal(kws[2 * i + 1], (cc,), jnp.float32) * 0.1 for i in range(ns)
    ]

    out = dilated_conv_pallas(x, weights, biases, dilations, group_width, stride)
    out = jax.block_until_ready(out)

    # Pure-JAX reference (matches torch grouped Conv2d semantics).
    refs = []
    for i, d in enumerate(dilations):
        xs = x[:, i * cc:(i + 1) * cc]
        r = jax.lax.conv_general_dilated(
            xs, weights[i],
            window_strides=(stride, stride),
            padding=[(d, d), (d, d)],
            rhs_dilation=(d, d),
            dimension_numbers=("NCHW", "OIHW", "NCHW"),
            feature_group_count=groups,
        )
        refs.append(r + biases[i][None, :, None, None])
    ref = jnp.concatenate(refs, axis=1)

    np.testing.assert_allclose(np.asarray(out), np.asarray(ref), rtol=1e-5, atol=1e-5)
    print("KERNEL_OK")
</pallas_src>

<mosaic_0001>
module attributes {stable_mosaic.version = 11 : i64} {
  func.func @kernel(%arg0: i32, %arg1: i32, %arg2: memref<1x2x4x256xf32, #tpu.memory_space<vmem>>, %arg3: memref<1x36x4x1xf32, #tpu.memory_space<vmem>>, %arg4: memref<1x2x4x1xf32, #tpu.memory_space<vmem>>, %arg5: memref<1x2x4x256xf32, #tpu.memory_space<vmem>>) attributes {dimension_semantics = [#tpu.dimension_semantics<parallel>, #tpu.dimension_semantics<parallel>], iteration_bounds = array<i64: 2, 1>, scalar_prefetch = 0 : i64, scratch_operands = 0 : i64, tpu.core_type = #tpu.core_type<tc>, window_params = [{transform_indices = @transform_0, window_bounds = array<i64: 1, 2, 4, 256>}, {transform_indices = @transform_1, window_bounds = array<i64: 1, 36, 4, 1>}, {transform_indices = @transform_2, window_bounds = array<i64: 1, 2, 4, 1>}, {transform_indices = @transform_3, window_bounds = array<i64: 1, 2, 4, 256>}]} {
    %c0 = arith.constant 0 : index
    %c0_0 = arith.constant 0 : index
    %c0_1 = arith.constant 0 : index
    %c0_2 = arith.constant 0 : index
    %0 = vector.load %arg2[%c0, %c0_0, %c0_1, %c0_2] : memref<1x2x4x256xf32, #tpu.memory_space<vmem>>, vector<1x2x4x256xf32>
    %1 = vector.shape_cast %0 : vector<1x2x4x256xf32> to vector<2x4x256xf32>
    %2 = tpu.iota {dimensions = array<i32: 2>} : vector<1x1x256xi32>
    %c16_i32 = arith.constant 16 : i32
    %c0_i32 = arith.constant 0 : i32
    %3 = arith.cmpi eq, %c16_i32, %c0_i32 : i32
    %c1_i32 = arith.constant 1 : i32
    %4 = arith.select %3, %c1_i32, %c16_i32 : i32
    %5 = vector.broadcast %4 : i32 to vector<1x1x256xi32>
    %6 = arith.remsi %2, %5 : vector<1x1x256xi32>
    %c0_i32_3 = arith.constant 0 : i32
    %7 = vector.broadcast %c0_i32_3 : i32 to vector<1x1x256xi32>
    %8 = arith.cmpi ne, %6, %7 : vector<1x1x256xi32>
    %c0_i32_4 = arith.constant 0 : i32
    %9 = vector.broadcast %c0_i32_4 : i32 to vector<1x1x256xi32>
    %10 = arith.cmpi slt, %6, %9 : vector<1x1x256xi32>
    %c0_i32_5 = arith.constant 0 : i32
    %11 = arith.cmpi slt, %4, %c0_i32_5 : i32
    %12 = vector.broadcast %11 : i1 to vector<1x1x256xi1>
    %13 = vector.broadcast %12 : vector<1x1x256xi1> to vector<1x1x256xi1>
    %14 = arith.xori %10, %13 : vector<1x1x256xi1>
    %15 = arith.andi %14, %8 : vector<1x1x256xi1>
    %16 = vector.broadcast %4 : i32 to vector<1x1x256xi32>
    %17 = arith.addi %6, %16 : vector<1x1x256xi32>
    %18 = arith.select %15, %17, %6 : vector<1x1x256xi1>, vector<1x1x256xi32>
    %c0_i32_6 = arith.constant 0 : i32
    %19 = arith.cmpi eq, %arg0, %c0_i32_6 : i32
    %20 = arith.extui %19 : i1 to i32
    %c0_i32_7 = arith.constant 0 : i32
    %21 = arith.cmpi ne, %20, %c0_i32_7 : i32
    scf.if %21 {
      %cst = arith.constant 0.000000e+00 : f32
      %25 = vector.broadcast %cst : f32 to vector<2x4x1xf32>
      %26 = vector.extract_strided_slice %1 {offsets = [0, 0, 0], sizes = [2, 4, 255], strides = [1, 1, 1]} : vector<2x4x256xf32> to vector<2x4x255xf32>
      %27 = tpu.concatenate %25, %26 in 2 : vector<2x4x1xf32>, vector<2x4x255xf32> -> vector<2x4x256xf32>
      %c-1_i32 = arith.constant -1 : i32
      %28 = vector.broadcast %c-1_i32 : i32 to vector<1x1x256xi32>
      %29 = arith.addi %18, %28 : vector<1x1x256xi32>
      %c0_i32_10 = arith.constant 0 : i32
      %30 = vector.broadcast %c0_i32_10 : i32 to vector<1x1x256xi32>
      %31 = arith.cmpi sge, %29, %30 : vector<1x1x256xi32>
      %c-1_i32_11 = arith.constant -1 : i32
      %32 = vector.broadcast %c-1_i32_11 : i32 to vector<1x1x256xi32>
      %33 = arith.addi %18, %32 : vector<1x1x256xi32>
      %c16_i32_12 = arith.constant 16 : i32
      %34 = vector.broadcast %c16_i32_12 : i32 to vector<1x1x256xi32>
      %35 = arith.cmpi slt, %33, %34 : vector<1x1x256xi32>
      %36 = arith.andi %31, %35 : vector<1x1x256xi1>
      %cst_13 = arith.constant 0.000000e+00 : f32
      %37 = vector.shape_cast %36 : vector<1x1x256xi1> to vector<1x1x256xi1>
      %38 = vector.broadcast %37 : vector<1x1x256xi1> to vector<2x4x256xi1>
      %39 = vector.broadcast %cst_13 : f32 to vector<2x4x256xf32>
      %40 = arith.select %38, %27, %39 : vector<2x4x256xi1>, vector<2x4x256xf32>
      %cst_14 = arith.constant 0.000000e+00 : f32
      %41 = vector.broadcast %cst_14 : f32 to vector<2x4x1xf32>
      %42 = vector.extract_strided_slice %1 {offsets = [0, 0, 1], sizes = [2, 4, 255], strides = [1, 1, 1]} : vector<2x4x256xf32> to vector<2x4x255xf32>
      %43 = tpu.concatenate %42, %41 in 2 : vector<2x4x255xf32>, vector<2x4x1xf32> -> vector<2x4x256xf32>
      %c1_i32_15 = arith.constant 1 : i32
      %44 = vector.broadcast %c1_i32_15 : i32 to vector<1x1x256xi32>
      %45 = arith.addi %18, %44 : vector<1x1x256xi32>
      %c0_i32_16 = arith.constant 0 : i32
      %46 = vector.broadcast %c0_i32_16 : i32 to vector<1x1x256xi32>
      %47 = arith.cmpi sge, %45, %46 : vector<1x1x256xi32>
      %c1_i32_17 = arith.constant 1 : i32
      %48 = vector.broadcast %c1_i32_17 : i32 to vector<1x1x256xi32>
      %49 = arith.addi %18, %48 : vector<1x1x256xi32>
      %c16_i32_18 = arith.constant 16 : i32
      %50 = vector.broadcast %c16_i32_18 : i32 to vector<1x1x256xi32>
      %51 = arith.cmpi slt, %49, %50 : vector<1x1x256xi32>
      %52 = arith.andi %47, %51 : vector<1x1x256xi1>
      %cst_19 = arith.constant 0.000000e+00 : f32
      %53 = vector.shape_cast %52 : vector<1x1x256xi1> to vector<1x1x256xi1>
      %54 = vector.broadcast %53 : vector<1x1x256xi1> to vector<2x4x256xi1>
      %55 = vector.broadcast %cst_19 : f32 to vector<2x4x256xf32>
      %56 = arith.select %54, %43, %55 : vector<2x4x256xi1>, vector<2x4x256xf32>
      %cst_20 = arith.constant 0.000000e+00 : f32
      %57 = vector.broadcast %cst_20 : f32 to vector<4x256xf32>
      %cst_21 = arith.constant 0.000000e+00 : f32
      %58 = vector.broadcast %cst_21 : f32 to vector<4x256xf32>
      %cst_22 = arith.constant 0.000000e+00 : f32
      %59 = vector.broadcast %cst_22 : f32 to vector<2x4x16xf32>
      %60 = vector.extract_strided_slice %40 {offsets = [0, 0, 0], sizes = [2, 4, 240], strides = [1, 1, 1]} : vector<2x4x256xf32> to vector<2x4x240xf32>
      %61 = tpu.concatenate %59, %60 in 2 : vector<2x4x16xf32>, vector<2x4x240xf32> -> vector<2x4x256xf32>
      %62 = vector.extract_strided_slice %61 {offsets = [0, 0, 0], sizes = [1, 4, 256], strides = [1, 1, 1]} : vector<2x4x256xf32> to vector<1x4x256xf32>
      %63 = vector.shape_cast %62 : vector<1x4x256xf32> to vector<4x256xf32>
      %c0_23 = arith.constant 0 : index
      %c0_24 = arith.constant 0 : index
      %c0_25 = arith.constant 0 : index
      %c0_26 = arith.constant 0 : index
      %64 = vector.load %arg3[%c0_23, %c0_24, %c0_25, %c0_26] : memref<1x36x4x1xf32, #tpu.memory_space<vmem>>, vector<1x1x4x1xf32>
      %65 = vector.shape_cast %64 : vector<1x1x4x1xf32> to vector<4x1xf32>
      %66 = vector.broadcast %65 : vector<4x1xf32> to vector<4x256xf32>
      %67 = arith.mulf %63, %66 : vector<4x256xf32>
      %68 = arith.addf %57, %67 : vector<4x256xf32>
      %c0_27 = arith.constant 0 : index
      %c18 = arith.constant 18 : index
      %c0_28 = arith.constant 0 : index
      %c0_29 = arith.constant 0 : index
      %69 = vector.load %arg3[%c0_27, %c18, %c0_28, %c0_29] : memref<1x36x4x1xf32, #tpu.memory_space<vmem>>, vector<1x1x4x1xf32>
      %70 = vector.shape_cast %69 : vector<1x1x4x1xf32> to vector<4x1xf32>
      %71 = vector.broadcast %70 : vector<4x1xf32> to vector<4x256xf32>
      %72 = arith.mulf %63, %71 : vector<4x256xf32>
      %73 = arith.addf %58, %72 : vector<4x256xf32>
      %74 = vector.extract_strided_slice %61 {offsets = [1, 0, 0], sizes = [1, 4, 256], strides = [1, 1, 1]} : vector<2x4x256xf32> to vector<1x4x256xf32>
      %75 = vector.shape_cast %74 : vector<1x4x256xf32> to vector<4x256xf32>
      %c0_30 = arith.constant 0 : index
      %c9 = arith.constant 9 : index
      %c0_31 = arith.constant 0 : index
      %c0_32 = arith.constant 0 : index
      %76 = vector.load %arg3[%c0_30, %c9, %c0_31, %c0_32] : memref<1x36x4x1xf32, #tpu.memory_space<vmem>>, vector<1x1x4x1xf32>
      %77 = vector.shape_cast %76 : vector<1x1x4x1xf32> to vector<4x1xf32>
      %78 = vector.broadcast %77 : vector<4x1xf32> to vector<4x256xf32>
      %79 = arith.mulf %75, %78 : vector<4x256xf32>
      %80 = arith.addf %68, %79 : vector<4x256xf32>
      %c0_33 = arith.constant 0 : index
      %c27 = arith.constant 27 : index
      %c0_34 = arith.constant 0 : index
      %c0_35 = arith.constant 0 : index
      %81 = vector.load %arg3[%c0_33, %c27, %c0_34, %c0_35] : memref<1x36x4x1xf32, #tpu.memory_space<vmem>>, vector<1x1x4x1xf32>
      %82 = vector.shape_cast %81 : vector<1x1x4x1xf32> to vector<4x1xf32>
      %83 = vector.broadcast %82 : vector<4x1xf32> to vector<4x256xf32>
      %84 = arith.mulf %75, %83 : vector<4x256xf32>
      %85 = arith.addf %73, %84 : vector<4x256xf32>
      %cst_36 = arith.constant 0.000000e+00 : f32
      %86 = vector.broadcast %cst_36 : f32 to vector<2x4x16xf32>
      %87 = vector.extract_strided_slice %1 {offsets = [0, 0, 0], sizes = [2, 4, 240], strides = [1, 1, 1]} : vector<2x4x256xf32> to vector<2x4x240xf32>
      %88 = tpu.concatenate %86, %87 in 2 : vector<2x4x16xf32>, vector<2x4x240xf32> -> vector<2x4x256xf32>
      %89 = vector.extract_strided_slice %88 {offsets = [0, 0, 0], sizes = [1, 4, 256], strides = [1, 1, 1]} : vector<2x4x256xf32> to vector<1x4x256xf32>
      %90 = vector.shape_cast %89 : vector<1x4x256xf32> to vector<4x256xf32>
      %c0_37 = arith.constant 0 : index
      %c1 = arith.constant 1 : index
      %c0_38 = arith.constant 0 : index
      %c0_39 = arith.constant 0 : index
      %91 = vector.load %arg3[%c0_37, %c1, %c0_38, %c0_39] : memref<1x36x4x1xf32, #tpu.memory_space<vmem>>, vector<1x1x4x1xf32>
      %92 = vector.shape_cast %91 : vector<1x1x4x1xf32> to vector<4x1xf32>
      %93 = vector.broadcast %92 : vector<4x1xf32> to vector<4x256xf32>
      %94 = arith.mulf %90, %93 : vector<4x256xf32>
      %95 = arith.addf %80, %94 : vector<4x256xf32>
      %c0_40 = arith.constant 0 : index
      %c19 = arith.constant 19 : index
      %c0_41 = arith.constant 0 : index
      %c0_42 = arith.constant 0 : index
      %96 = vector.load %arg3[%c0_40, %c19, %c0_41, %c0_42] : memref<1x36x4x1xf32, #tpu.memory_space<vmem>>, vector<1x1x4x1xf32>
      %97 = vector.shape_cast %96 : vector<1x1x4x1xf32> to vector<4x1xf32>
      %98 = vector.broadcast %97 : vector<4x1xf32> to vector<4x256xf32>
      %99 = arith.mulf %90, %98 : vector<4x256xf32>
      %100 = arith.addf %85, %99 : vector<4x256xf32>
      %101 = vector.extract_strided_slice %88 {offsets = [1, 0, 0], sizes = [1, 4, 256], strides = [1, 1, 1]} : vector<2x4x256xf32> to vector<1x4x256xf32>
      %102 = vector.shape_cast %101 : vector<1x4x256xf32> to vector<4x256xf32>
      %c0_43 = arith.constant 0 : index
      %c10 = arith.constant 10 : index
      %c0_44 = arith.constant 0 : index
      %c0_45 = arith.constant 0 : index
      %103 = vector.load %arg3[%c0_43, %c10, %c0_44, %c0_45] : memref<1x36x4x1xf32, #tpu.memory_space<vmem>>, vector<1x1x4x1xf32>
      %104 = vector.shape_cast %103 : vector<1x1x4x1xf32> to vector<4x1xf32>
      %105 = vector.broadcast %104 : vector<4x1xf32> to vector<4x256xf32>
      %106 = arith.mulf %102, %105 : vector<4x256xf32>
      %107 = arith.addf %95, %106 : vector<4x256xf32>
      %c0_46 = arith.constant 0 : index
      %c28 = arith.constant 28 : index
      %c0_47 = arith.constant 0 : index
      %c0_48 = arith.constant 0 : index
      %108 = vector.load %arg3[%c0_46, %c28, %c0_47, %c0_48] : memref<1x36x4x1xf32, #tpu.memory_space<vmem>>, vector<1x1x4x1xf32>
      %109 = vector.shape_cast %108 : vector<1x1x4x1xf32> to vector<4x1xf32>
      %110 = vector.broadcast %109 : vector<4x1xf32> to vector<4x256xf32>
      %111 = arith.mulf %102, %110 : vector<4x256xf32>
      %112 = arith.addf %100, %111 : vector<4x256xf32>
      %cst_49 = arith.constant 0.000000e+00 : f32
      %113 = vector.broadcast %cst_49 : f32 to vector<2x4x16xf32>
      %114 = vector.extract_strided_slice %56 {offsets = [0, 0, 0], sizes = [2, 4, 240], strides = [1, 1, 1]} : vector<2x4x256xf32> to vector<2x4x240xf32>
      %115 = tpu.concatenate %113, %114 in 2 : vector<2x4x16xf32>, vector<2x4x240xf32> -> vector<2x4x256xf32>
      %116 = vector.extract_strided_slice %115 {offsets = [0, 0, 0], sizes = [1, 4, 256], strides = [1, 1, 1]} : vector<2x4x256xf32> to vector<1x4x256xf32>
      %117 = vector.shape_cast %116 : vector<1x4x256xf32> to vector<4x256xf32>
      %c0_50 = arith.constant 0 : index
      %c2 = arith.constant 2 : index
      %c0_51 = arith.constant 0 : index
      %c0_52 = arith.constant 0 : index
      %118 = vector.load %arg3[%c0_50, %c2, %c0_51, %c0_52] : memref<1x36x4x1xf32, #tpu.memory_space<vmem>>, vector<1x1x4x1xf32>
      %119 = vector.shape_cast %118 : vector<1x1x4x1xf32> to vector<4x1xf32>
      %120 = vector.broadcast %119 : vector<4x1xf32> to vector<4x256xf32>
      %121 = arith.mulf %117, %120 : vector<4x256xf32>
      %122 = arith.addf %107, %121 : vector<4x256xf32>
      %c0_53 = arith.constant 0 : index
      %c20 = arith.constant 20 : index
      %c0_54 = arith.constant 0 : index
      %c0_55 = arith.constant 0 : index
      %123 = vector.load %arg3[%c0_53, %c20, %c0_54, %c0_55] : memref<1x36x4x1xf32, #tpu.memory_space<vmem>>, vector<1x1x4x1xf32>
      %124 = vector.shape_cast %123 : vector<1x1x4x1xf32> to vector<4x1xf32>
      %125 = vector.broadcast %124 : vector<4x1xf32> to vector<4x256xf32>
      %126 = arith.mulf %117, %125 : vector<4x256xf32>
      %127 = arith.addf %112, %126 : vector<4x256xf32>
      %128 = vector.extract_strided_slice %115 {offsets = [1, 0, 0], sizes = [1, 4, 256], strides = [1, 1, 1]} : vector<2x4x256xf32> to vector<1x4x256xf32>
      %129 = vector.shape_cast %128 : vector<1x4x256xf32> to vector<4x256xf32>
      %c0_56 = arith.constant 0 : index
      %c11 = arith.constant 11 : index
      %c0_57 = arith.constant 0 : index
      %c0_58 = arith.constant 0 : index
      %130 = vector.load %arg3[%c0_56, %c11, %c0_57, %c0_58] : memref<1x36x4x1xf32, #tpu.memory_space<vmem>>, vector<1x1x4x1xf32>
      %131 = vector.shape_cast %130 : vector<1x1x4x1xf32> to vector<4x1xf32>
      %132 = vector.broadcast %131 : vector<4x1xf32> to vector<4x256xf32>
      %133 = arith.mulf %129, %132 : vector<4x256xf32>
      %134 = arith.addf %122, %133 : vector<4x256xf32>
      %c0_59 = arith.constant 0 : index
      %c29 = arith.constant 29 : index
      %c0_60 = arith.constant 0 : index
      %c0_61 = arith.constant 0 : index
      %135 = vector.load %arg3[%c0_59, %c29, %c0_60, %c0_61] : memref<1x36x4x1xf32, #tpu.memory_space<vmem>>, vector<1x1x4x1xf32>
      %136 = vector.shape_cast %135 : vector<1x1x4x1xf32> to vector<4x1xf32>
      %137 = vector.broadcast %136 : vector<4x1xf32> to vector<4x256xf32>
      %138 = arith.mulf %129, %137 : vector<4x256xf32>
      %139 = arith.addf %127, %138 : vector<4x256xf32>
      %140 = vector.extract_strided_slice %40 {offsets = [0, 0, 0], sizes = [1, 4, 256], strides = [1, 1, 1]} : vector<2x4x256xf32> to vector<1x4x256xf32>
      %141 = vector.shape_cast %140 : vector<1x4x256xf32> to vector<4x256xf32>
      %c0_62 = arith.constant 0 : index
      %c3 = arith.constant 3 : index
      %c0_63 = arith.constant 0 : index
      %c0_64 = arith.constant 0 : index
      %142 = vector.load %arg3[%c0_62, %c3, %c0_63, %c0_64] : memref<1x36x4x1xf32, #tpu.memory_space<vmem>>, vector<1x1x4x1xf32>
      %143 = vector.shape_cast %142 : vector<1x1x4x1xf32> to vector<4x1xf32>
      %144 = vector.broadcast %143 : vector<4x1xf32> to vector<4x256xf32>
      %145 = arith.mulf %141, %144 : vector<4x256xf32>
      %146 = arith.addf %134, %145 : vector<4x256xf32>
      %c0_65 = arith.constant 0 : index
      %c21 = arith.constant 21 : index
      %c0_66 = arith.constant 0 : index
      %c0_67 = arith.constant 0 : index
      %147 = vector.load %arg3[%c0_65, %c21, %c0_66, %c0_67] : memref<1x36x4x1xf32, #tpu.memory_space<vmem>>, vector<1x1x4x1xf32>
      %148 = vector.shape_cast %147 : vector<1x1x4x1xf32> to vector<4x1xf32>
      %149 = vector.broadcast %148 : vector<4x1xf32> to vector<4x256xf32>
      %150 = arith.mulf %141, %149 : vector<4x256xf32>
      %151 = arith.addf %139, %150 : vector<4x256xf32>
      %152 = vector.extract_strided_slice %40 {offsets = [1, 0, 0], sizes = [1, 4, 256], strides = [1, 1, 1]} : vector<2x4x256xf32> to vector<1x4x256xf32>
      %153 = vector.shape_cast %152 : vector<1x4x256xf32> to vector<4x256xf32>
      %c0_68 = arith.constant 0 : index
      %c12 = arith.constant 12 : index
      %c0_69 = arith.constant 0 : index
      %c0_70 = arith.constant 0 : index
      %154 = vector.load %arg3[%c0_68, %c12, %c0_69, %c0_70] : memref<1x36x4x1xf32, #tpu.memory_space<vmem>>, vector<1x1x4x1xf32>
      %155 = vector.shape_cast %154 : vector<1x1x4x1xf32> to vector<4x1xf32>
      %156 = vector.broadcast %155 : vector<4x1xf32> to vector<4x256xf32>
      %157 = arith.mulf %153, %156 : vector<4x256xf32>
      %158 = arith.addf %146, %157 : vector<4x256xf32>
      %c0_71 = arith.constant 0 : index
      %c30 = arith.constant 30 : index
      %c0_72 = arith.constant 0 : index
      %c0_73 = arith.constant 0 : index
      %159 = vector.load %arg3[%c0_71, %c30, %c0_72, %c0_73] : memref<1x36x4x1xf32, #tpu.memory_space<vmem>>, vector<1x1x4x1xf32>
      %160 = vector.shape_cast %159 : vector<1x1x4x1xf32> to vector<4x1xf32>
      %161 = vector.broadcast %160 : vector<4x1xf32> to vector<4x256xf32>
      %162 = arith.mulf %153, %161 : vector<4x256xf32>
      %163 = arith.addf %151, %162 : vector<4x256xf32>
      %164 = vector.extract_strided_slice %1 {offsets = [0, 0, 0], sizes = [1, 4, 256], strides = [1, 1, 1]} : vector<2x4x256xf32> to vector<1x4x256xf32>
      %165 = vector.shape_cast %164 : vector<1x4x256xf32> to vector<4x256xf32>
      %c0_74 = arith.constant 0 : index
      %c4 = arith.constant 4 : index
      %c0_75 = arith.constant 0 : index
      %c0_76 = arith.constant 0 : index
      %166 = vector.load %arg3[%c0_74, %c4, %c0_75, %c0_76] : memref<1x36x4x1xf32, #tpu.memory_space<vmem>>, vector<1x1x4x1xf32>
      %167 = vector.shape_cast %166 : vector<1x1x4x1xf32> to vector<4x1xf32>
      %168 = vector.broadcast %167 : vector<4x1xf32> to vector<4x256xf32>
      %169 = arith.mulf %165, %168 : vector<4x256xf32>
      %170 = arith.addf %158, %169 : vector<4x256xf32>
      %c0_77 = arith.constant 0 : index
      %c22 = arith.constant 22 : index
      %c0_78 = arith.constant 0 : index
      %c0_79 = arith.constant 0 : index
      %171 = vector.load %arg3[%c0_77, %c22, %c0_78, %c0_79] : memref<1x36x4x1xf32, #tpu.memory_space<vmem>>, vector<1x1x4x1xf32>
      %172 = vector.shape_cast %171 : vector<1x1x4x1xf32> to vector<4x1xf32>
      %173 = vector.broadcast %172 : vector<4x1xf32> to vector<4x256xf32>
      %174 = arith.mulf %165, %173 : vector<4x256xf32>
      %175 = arith.addf %163, %174 : vector<4x256xf32>
      %176 = vector.extract_strided_slice %1 {offsets = [1, 0, 0], sizes = [1, 4, 256], strides = [1, 1, 1]} : vector<2x4x256xf32> to vector<1x4x256xf32>
      %177 = vector.shape_cast %176 : vector<1x4x256xf32> to vector<4x256xf32>
      %c0_80 = arith.constant 0 : index
      %c13 = arith.constant 13 : index
      %c0_81 = arith.constant 0 : index
      %c0_82 = arith.constant 0 : index
      %178 = vector.load %arg3[%c0_80, %c13, %c0_81, %c0_82] : memref<1x36x4x1xf32, #tpu.memory_space<vmem>>, vector<1x1x4x1xf32>
      %179 = vector.shape_cast %178 : vector<1x1x4x1xf32> to vector<4x1xf32>
      %180 = vector.broadcast %179 : vector<4x1xf32> to vector<4x256xf32>
      %181 = arith.mulf %177, %180 : vector<4x256xf32>
      %182 = arith.addf %170, %181 : vector<4x256xf32>
      %c0_83 = arith.constant 0 : index
      %c31 = arith.constant 31 : index
      %c0_84 = arith.constant 0 : index
      %c0_85 = arith.constant 0 : index
      %183 = vector.load %arg3[%c0_83, %c31, %c0_84, %c0_85] : memref<1x36x4x1xf32, #tpu.memory_space<vmem>>, vector<1x1x4x1xf32>
      %184 = vector.shape_cast %183 : vector<1x1x4x1xf32> to vector<4x1xf32>
      %185 = vector.broadcast %184 : vector<4x1xf32> to vector<4x256xf32>
      %186 = arith.mulf %177, %185 : vector<4x256xf32>
      %187 = arith.addf %175, %186 : vector<4x256xf32>
      %188 = vector.extract_strided_slice %56 {offsets = [0, 0, 0], sizes = [1, 4, 256], strides = [1, 1, 1]} : vector<2x4x256xf32> to vector<1x4x256xf32>
      %189 = vector.shape_cast %188 : vector<1x4x256xf32> to vector<4x256xf32>
      %c0_86 = arith.constant 0 : index
      %c5 = arith.constant 5 : index
      %c0_87 = arith.constant 0 : index
      %c0_88 = arith.constant 0 : index
      %190 = vector.load %arg3[%c0_86, %c5, %c0_87, %c0_88] : memref<1x36x4x1xf32, #tpu.memory_space<vmem>>, vector<1x1x4x1xf32>
      %191 = vector.shape_cast %190 : vector<1x1x4x1xf32> to vector<4x1xf32>
      %192 = vector.broadcast %191 : vector<4x1xf32> to vector<4x256xf32>
      %193 = arith.mulf %189, %192 : vector<4x256xf32>
      %194 = arith.addf %182, %193 : vector<4x256xf32>
      %c0_89 = arith.constant 0 : index
      %c23 = arith.constant 23 : index
      %c0_90 = arith.constant 0 : index
      %c0_91 = arith.constant 0 : index
      %195 = vector.load %arg3[%c0_89, %c23, %c0_90, %c0_91] : memref<1x36x4x1xf32, #tpu.memory_space<vmem>>, vector<1x1x4x1xf32>
      %196 = vector.shape_cast %195 : vector<1x1x4x1xf32> to vector<4x1xf32>
      %197 = vector.broadcast %196 : vector<4x1xf32> to vector<4x256xf32>
      %198 = arith.mulf %189, %197 : vector<4x256xf32>
      %199 = arith.addf %187, %198 : vector<4x256xf32>
      %200 = vector.extract_strided_slice %56 {offsets = [1, 0, 0], sizes = [1, 4, 256], strides = [1, 1, 1]} : vector<2x4x256xf32> to vector<1x4x256xf32>
      %201 = vector.shape_cast %200 : vector<1x4x256xf32> to vector<4x256xf32>
      %c0_92 = arith.constant 0 : index
      %c14 = arith.constant 14 : index
      %c0_93 = arith.constant 0 : index
      %c0_94 = arith.constant 0 : index
      %202 = vector.load %arg3[%c0_92, %c14, %c0_93, %c0_94] : memref<1x36x4x1xf32, #tpu.memory_space<vmem>>, vector<1x1x4x1xf32>
      %203 = vector.shape_cast %202 : vector<1x1x4x1xf32> to vector<4x1xf32>
      %204 = vector.broadcast %203 : vector<4x1xf32> to vector<4x256xf32>
      %205 = arith.mulf %201, %204 : vector<4x256xf32>
      %206 = arith.addf %194, %205 : vector<4x256xf32>
      %c0_95 = arith.constant 0 : index
      %c32 = arith.constant 32 : index
      %c0_96 = arith.constant 0 : index
      %c0_97 = arith.constant 0 : index
      %207 = vector.load %arg3[%c0_95, %c32, %c0_96, %c0_97] : memref<1x36x4x1xf32, #tpu.memory_space<vmem>>, vector<1x1x4x1xf32>
      %208 = vector.shape_cast %207 : vector<1x1x4x1xf32> to vector<4x1xf32>
      %209 = vector.broadcast %208 : vector<4x1xf32> to vector<4x256xf32>
      %210 = arith.mulf %201, %209 : vector<4x256xf32>
      %211 = arith.addf %199, %210 : vector<4x256xf32>
      %cst_98 = arith.constant 0.000000e+00 : f32
      %212 = vector.broadcast %cst_98 : f32 to vector<2x4x16xf32>
      %213 = vector.extract_strided_slice %40 {offsets = [0, 0, 16], sizes = [2, 4, 240], strides = [1, 1, 1]} : vector<2x4x256xf32> to vector<2x4x240xf32>
      %214 = tpu.concatenate %213, %212 in 2 : vector<2x4x240xf32>, vector<2x4x16xf32> -> vector<2x4x256xf32>
      %215 = vector.extract_strided_slice %214 {offsets = [0, 0, 0], sizes = [1, 4, 256], strides = [1, 1, 1]} : vector<2x4x256xf32> to vector<1x4x256xf32>
      %216 = vector.shape_cast %215 : vector<1x4x256xf32> to vector<4x256xf32>
      %c0_99 = arith.constant 0 : index
      %c6 = arith.constant 6 : index
      %c0_100 = arith.constant 0 : index
      %c0_101 = arith.constant 0 : index
      %217 = vector.load %arg3[%c0_99, %c6, %c0_100, %c0_101] : memref<1x36x4x1xf32, #tpu.memory_space<vmem>>, vector<1x1x4x1xf32>
      %218 = vector.shape_cast %217 : vector<1x1x4x1xf32> to vector<4x1xf32>
      %219 = vector.broadcast %218 : vector<4x1xf32> to vector<4x256xf32>
      %220 = arith.mulf %216, %219 : vector<4x256xf32>
      %221 = arith.addf %206, %220 : vector<4x256xf32>
      %c0_102 = arith.constant 0 : index
      %c24 = arith.constant 24 : index
      %c0_103 = arith.constant 0 : index
      %c0_104 = arith.constant 0 : index
      %222 = vector.load %arg3[%c0_102, %c24, %c0_103, %c0_104] : memref<1x36x4x1xf32, #tpu.memory_space<vmem>>, vector<1x1x4x1xf32>
      %223 = vector.shape_cast %222 : vector<1x1x4x1xf32> to vector<4x1xf32>
      %224 = vector.broadcast %223 : vector<4x1xf32> to vector<4x256xf32>
      %225 = arith.mulf %216, %224 : vector<4x256xf32>
      %226 = arith.addf %211, %225 : vector<4x256xf32>
      %227 = vector.extract_strided_slice %214 {offsets = [1, 0, 0], sizes = [1, 4, 256], strides = [1, 1, 1]} : vector<2x4x256xf32> to vector<1x4x256xf32>
      %228 = vector.shape_cast %227 : vector<1x4x256xf32> to vector<4x256xf32>
      %c0_105 = arith.constant 0 : index
      %c15 = arith.constant 15 : index
      %c0_106 = arith.constant 0 : index
      %c0_107 = arith.constant 0 : index
      %229 = vector.load %arg3[%c0_105, %c15, %c0_106, %c0_107] : memref<1x36x4x1xf32, #tpu.memory_space<vmem>>, vector<1x1x4x1xf32>
      %230 = vector.shape_cast %229 : vector<1x1x4x1xf32> to vector<4x1xf32>
      %231 = vector.broadcast %230 : vector<4x1xf32> to vector<4x256xf32>
      %232 = arith.mulf %228, %231 : vector<4x256xf32>
      %233 = arith.addf %221, %232 : vector<4x256xf32>
      %c0_108 = arith.constant 0 : index
      %c33 = arith.constant 33 : index
      %c0_109 = arith.constant 0 : index
      %c0_110 = arith.constant 0 : index
      %234 = vector.load %arg3[%c0_108, %c33, %c0_109, %c0_110] : memref<1x36x4x1xf32, #tpu.memory_space<vmem>>, vector<1x1x4x1xf32>
      %235 = vector.shape_cast %234 : vector<1x1x4x1xf32> to vector<4x1xf32>
      %236 = vector.broadcast %235 : vector<4x1xf32> to vector<4x256xf32>
      %237 = arith.mulf %228, %236 : vector<4x256xf32>
      %238 = arith.addf %226, %237 : vector<4x256xf32>
      %cst_111 = arith.constant 0.000000e+00 : f32
      %239 = vector.broadcast %cst_111 : f32 to vector<2x4x16xf32>
      %240 = vector.extract_strided_slice %1 {offsets = [0, 0, 16], sizes = [2, 4, 240], strides = [1, 1, 1]} : vector<2x4x256xf32> to vector<2x4x240xf32>
      %241 = tpu.concatenate %240, %239 in 2 : vector<2x4x240xf32>, vector<2x4x16xf32> -> vector<2x4x256xf32>
      %242 = vector.extract_strided_slice %241 {offsets = [0, 0, 0], sizes = [1, 4, 256], strides = [1, 1, 1]} : vector<2x4x256xf32> to vector<1x4x256xf32>
      %243 = vector.shape_cast %242 : vector<1x4x256xf32> to vector<4x256xf32>
      %c0_112 = arith.constant 0 : index
      %c7 = arith.constant 7 : index
      %c0_113 = arith.constant 0 : index
      %c0_114 = arith.constant 0 : index
      %244 = vector.load %arg3[%c0_112, %c7, %c0_113, %c0_114] : memref<1x36x4x1xf32, #tpu.memory_space<vmem>>, vector<1x1x4x1xf32>
      %245 = vector.shape_cast %244 : vector<1x1x4x1xf32> to vector<4x1xf32>
      %246 = vector.broadcast %245 : vector<4x1xf32> to vector<4x256xf32>
      %247 = arith.mulf %243, %246 : vector<4x256xf32>
      %248 = arith.addf %233, %247 : vector<4x256xf32>
      %c0_115 = arith.constant 0 : index
      %c25 = arith.constant 25 : index
      %c0_116 = arith.constant 0 : index
      %c0_117 = arith.constant 0 : index
      %249 = vector.load %arg3[%c0_115, %c25, %c0_116, %c0_117] : memref<1x36x4x1xf32, #tpu.memory_space<vmem>>, vector<1x1x4x1xf32>
      %250 = vector.shape_cast %249 : vector<1x1x4x1xf32> to vector<4x1xf32>
      %251 = vector.broadcast %250 : vector<4x1xf32> to vector<4x256xf32>
      %252 = arith.mulf %243, %251 : vector<4x256xf32>
      %253 = arith.addf %238, %252 : vector<4x256xf32>
      %254 = vector.extract_strided_slice %241 {offsets = [1, 0, 0], sizes = [1, 4, 256], strides = [1, 1, 1]} : vector<2x4x256xf32> to vector<1x4x256xf32>
      %255 = vector.shape_cast %254 : vector<1x4x256xf32> to vector<4x256xf32>
      %c0_118 = arith.constant 0 : index
      %c16 = arith.constant 16 : index
      %c0_119 = arith.constant 0 : index
      %c0_120 = arith.constant 0 : index
      %256 = vector.load %arg3[%c0_118, %c16, %c0_119, %c0_120] : memref<1x36x4x1xf32, #tpu.memory_space<vmem>>, vector<1x1x4x1xf32>
      %257 = vector.shape_cast %256 : vector<1x1x4x1xf32> to vector<4x1xf32>
      %258 = vector.broadcast %257 : vector<4x1xf32> to vector<4x256xf32>
      %259 = arith.mulf %255, %258 : vector<4x256xf32>
      %260 = arith.addf %248, %259 : vector<4x256xf32>
      %c0_121 = arith.constant 0 : index
      %c34 = arith.constant 34 : index
      %c0_122 = arith.constant 0 : index
      %c0_123 = arith.constant 0 : index
      %261 = vector.load %arg3[%c0_121, %c34, %c0_122, %c0_123] : memref<1x36x4x1xf32, #tpu.memory_space<vmem>>, vector<1x1x4x1xf32>
      %262 = vector.shape_cast %261 : vector<1x1x4x1xf32> to vector<4x1xf32>
      %263 = vector.broadcast %262 : vector<4x1xf32> to vector<4x256xf32>
      %264 = arith.mulf %255, %263 : vector<4x256xf32>
      %265 = arith.addf %253, %264 : vector<4x256xf32>
      %cst_124 = arith.constant 0.000000e+00 : f32
      %266 = vector.broadcast %cst_124 : f32 to vector<2x4x16xf32>
      %267 = vector.extract_strided_slice %56 {offsets = [0, 0, 16], sizes = [2, 4, 240], strides = [1, 1, 1]} : vector<2x4x256xf32> to vector<2x4x240xf32>
      %268 = tpu.concatenate %267, %266 in 2 : vector<2x4x240xf32>, vector<2x4x16xf32> -> vector<2x4x256xf32>
      %269 = vector.extract_strided_slice %268 {offsets = [0, 0, 0], sizes = [1, 4, 256], strides = [1, 1, 1]} : vector<2x4x256xf32> to vector<1x4x256xf32>
      %270 = vector.shape_cast %269 : vector<1x4x256xf32> to vector<4x256xf32>
      %c0_125 = arith.constant 0 : index
      %c8 = arith.constant 8 : index
      %c0_126 = arith.constant 0 : index
      %c0_127 = arith.constant 0 : index
      %271 = vector.load %arg3[%c0_125, %c8, %c0_126, %c0_127] : memref<1x36x4x1xf32, #tpu.memory_space<vmem>>, vector<1x1x4x1xf32>
      %272 = vector.shape_cast %271 : vector<1x1x4x1xf32> to vector<4x1xf32>
      %273 = vector.broadcast %272 : vector<4x1xf32> to vector<4x256xf32>
      %274 = arith.mulf %270, %273 : vector<4x256xf32>
      %275 = arith.addf %260, %274 : vector<4x256xf32>
      %c0_128 = arith.constant 0 : index
      %c26 = arith.constant 26 : index
      %c0_129 = arith.constant 0 : index
      %c0_130 = arith.constant 0 : index
      %276 = vector.load %arg3[%c0_128, %c26, %c0_129, %c0_130] : memref<1x36x4x1xf32, #tpu.memory_space<vmem>>, vector<1x1x4x1xf32>
      %277 = vector.shape_cast %276 : vector<1x1x4x1xf32> to vector<4x1xf32>
      %278 = vector.broadcast %277 : vector<4x1xf32> to vector<4x256xf32>
      %279 = arith.mulf %270, %278 : vector<4x256xf32>
      %280 = arith.addf %265, %279 : vector<4x256xf32>
      %281 = vector.extract_strided_slice %268 {offsets = [1, 0, 0], sizes = [1, 4, 256], strides = [1, 1, 1]} : vector<2x4x256xf32> to vector<1x4x256xf32>
      %282 = vector.shape_cast %281 : vector<1x4x256xf32> to vector<4x256xf32>
      %c0_131 = arith.constant 0 : index
      %c17 = arith.constant 17 : index
      %c0_132 = arith.constant 0 : index
      %c0_133 = arith.constant 0 : index
      %283 = vector.load %arg3[%c0_131, %c17, %c0_132, %c0_133] : memref<1x36x4x1xf32, #tpu.memory_space<vmem>>, vector<1x1x4x1xf32>
      %284 = vector.shape_cast %283 : vector<1x1x4x1xf32> to vector<4x1xf32>
      %285 = vector.broadcast %284 : vector<4x1xf32> to vector<4x256xf32>
      %286 = arith.mulf %282, %285 : vector<4x256xf32>
      %287 = arith.addf %275, %286 : vector<4x256xf32>
      %c0_134 = arith.constant 0 : index
      %c35 = arith.constant 35 : index
      %c0_135 = arith.constant 0 : index
      %c0_136 = arith.constant 0 : index
      %288 = vector.load %arg3[%c0_134, %c35, %c0_135, %c0_136] : memref<1x36x4x1xf32, #tpu.memory_space<vmem>>, vector<1x1x4x1xf32>
      %289 = vector.shape_cast %288 : vector<1x1x4x1xf32> to vector<4x1xf32>
      %290 = vector.broadcast %289 : vector<4x1xf32> to vector<4x256xf32>
      %291 = arith.mulf %282, %290 : vector<4x256xf32>
      %292 = arith.addf %280, %291 : vector<4x256xf32>
      %c0_137 = arith.constant 0 : index
      %c0_138 = arith.constant 0 : index
      %c0_139 = arith.constant 0 : index
      %c0_140 = arith.constant 0 : index
      %293 = vector.load %arg4[%c0_137, %c0_138, %c0_139, %c0_140] : memref<1x2x4x1xf32, #tpu.memory_space<vmem>>, vector<1x1x4x1xf32>
      %294 = vector.shape_cast %293 : vector<1x1x4x1xf32> to vector<4x1xf32>
      %295 = vector.broadcast %294 : vector<4x1xf32> to vector<4x256xf32>
      %296 = arith.addf %287, %295 : vector<4x256xf32>
      %c0_141 = arith.constant 0 : index
      %c0_142 = arith.constant 0 : index
      %c0_143 = arith.constant 0 : index
      %c0_144 = arith.constant 0 : index
      %297 = vector.load %arg5[%c0_141, %c0_142, %c0_143, %c0_144] : memref<1x2x4x256xf32, #tpu.memory_space<vmem>>, vector<1x1x4x256xf32>
      %298 = vector.shape_cast %297 : vector<1x1x4x256xf32> to vector<4x256xf32>
      %299 = vector.shape_cast %296 : vector<4x256xf32> to vector<1x1x4x256xf32>
      tpu.vector_store %arg5[%c0_141, %c0_142, %c0_143, %c0_144], %299 {strides = array<i32>} : memref<1x2x4x256xf32, #tpu.memory_space<vmem>>, vector<1x1x4x256xf32>,
      %c0_145 = arith.constant 0 : index
      %c1_146 = arith.constant 1 : index
      %c0_147 = arith.constant 0 : index
      %c0_148 = arith.constant 0 : index
      %300 = vector.load %arg4[%c0_145, %c1_146, %c0_147, %c0_148] : memref<1x2x4x1xf32, #tpu.memory_space<vmem>>, vector<1x1x4x1xf32>
      %301 = vector.shape_cast %300 : vector<1x1x4x1xf32> to vector<4x1xf32>
      %302 = vector.broadcast %301 : vector<4x1xf32> to vector<4x256xf32>
      %303 = arith.addf %292, %302 : vector<4x256xf32>
      %c0_149 = arith.constant 0 : index
      %c1_150 = arith.constant 1 : index
      %c0_151 = arith.constant 0 : index
      %c0_152 = arith.constant 0 : index
      %304 = vector.load %arg5[%c0_149, %c1_150, %c0_151, %c0_152] : memref<1x2x4x256xf32, #tpu.memory_space<vmem>>, vector<1x1x4x256xf32>
      %305 = vector.shape_cast %304 : vector<1x1x4x256xf32> to vector<4x256xf32>
      %306 = vector.shape_cast %303 : vector<4x256xf32> to vector<1x1x4x256xf32>
      tpu.vector_store %arg5[%c0_149, %c1_150, %c0_151, %c0_152], %306 {strides = array<i32>} : memref<1x2x4x256xf32, #tpu.memory_space<vmem>>, vector<1x1x4x256xf32>,
    } else {
    }
    %c1_i32_8 = arith.constant 1 : i32
    %22 = arith.cmpi eq, %arg0, %c1_i32_8 : i32
    %23 = arith.extui %22 : i1 to i32
    %c0_i32_9 = arith.constant 0 : i32
    %24 = arith.cmpi ne, %23, %c0_i32_9 : i32
    scf.if %24 {
      %cst = arith.constant 0.000000e+00 : f32
      %25 = vector.broadcast %cst : f32 to vector<2x4x2xf32>
      %26 = vector.extract_strided_slice %1 {offsets = [0, 0, 0], sizes = [2, 4, 254], strides = [1, 1, 1]} : vector<2x4x256xf32> to vector<2x4x254xf32>
      %27 = tpu.concatenate %25, %26 in 2 : vector<2x4x2xf32>, vector<2x4x254xf32> -> vector<2x4x256xf32>
      %c-2_i32 = arith.constant -2 : i32
      %28 = vector.broadcast %c-2_i32 : i32 to vector<1x1x256xi32>
      %29 = arith.addi %18, %28 : vector<1x1x256xi32>
      %c0_i32_10 = arith.constant 0 : i32
      %30 = vector.broadcast %c0_i32_10 : i32 to vector<1x1x256xi32>
      %31 = arith.cmpi sge, %29, %30 : vector<1x1x256xi32>
      %c-2_i32_11 = arith.constant -2 : i32
      %32 = vector.broadcast %c-2_i32_11 : i32 to vector<1x1x256xi32>
      %33 = arith.addi %18, %32 : vector<1x1x256xi32>
      %c16_i32_12 = arith.constant 16 : i32
      %34 = vector.broadcast %c16_i32_12 : i32 to vector<1x1x256xi32>
      %35 = arith.cmpi slt, %33, %34 : vector<1x1x256xi32>
      %36 = arith.andi %31, %35 : vector<1x1x256xi1>
      %cst_13 = arith.constant 0.000000e+00 : f32
      %37 = vector.shape_cast %36 : vector<1x1x256xi1> to vector<1x1x256xi1>
      %38 = vector.broadcast %37 : vector<1x1x256xi1> to vector<2x4x256xi1>
      %39 = vector.broadcast %cst_13 : f32 to vector<2x4x256xf32>
      %40 = arith.select %38, %27, %39 : vector<2x4x256xi1>, vector<2x4x256xf32>
      %cst_14 = arith.constant 0.000000e+00 : f32
      %41 = vector.broadcast %cst_14 : f32 to vector<2x4x2xf32>
      %42 = vector.extract_strided_slice %1 {offsets = [0, 0, 2], sizes = [2, 4, 254], strides = [1, 1, 1]} : vector<2x4x256xf32> to vector<2x4x254xf32>
      %43 = tpu.concatenate %42, %41 in 2 : vector<2x4x254xf32>, vector<2x4x2xf32> -> vector<2x4x256xf32>
      %c2_i32 = arith.constant 2 : i32
      %44 = vector.broadcast %c2_i32 : i32 to vector<1x1x256xi32>
      %45 = arith.addi %18, %44 : vector<1x1x256xi32>
      %c0_i32_15 = arith.constant 0 : i32
      %46 = vector.broadcast %c0_i32_15 : i32 to vector<1x1x256xi32>
      %47 = arith.cmpi sge, %45, %46 : vector<1x1x256xi32>
      %c2_i32_16 = arith.constant 2 : i32
      %48 = vector.broadcast %c2_i32_16 : i32 to vector<1x1x256xi32>
      %49 = arith.addi %18, %48 : vector<1x1x256xi32>
      %c16_i32_17 = arith.constant 16 : i32
      %50 = vector.broadcast %c16_i32_17 : i32 to vector<1x1x256xi32>
      %51 = arith.cmpi slt, %49, %50 : vector<1x1x256xi32>
      %52 = arith.andi %47, %51 : vector<1x1x256xi1>
      %cst_18 = arith.constant 0.000000e+00 : f32
      %53 = vector.shape_cast %52 : vector<1x1x256xi1> to vector<1x1x256xi1>
      %54 = vector.broadcast %53 : vector<1x1x256xi1> to vector<2x4x256xi1>
      %55 = vector.broadcast %cst_18 : f32 to vector<2x4x256xf32>
      %56 = arith.select %54, %43, %55 : vector<2x4x256xi1>, vector<2x4x256xf32>
      %cst_19 = arith.constant 0.000000e+00 : f32
      %57 = vector.broadcast %cst_19 : f32 to vector<4x256xf32>
      %cst_20 = arith.constant 0.000000e+00 : f32
      %58 = vector.broadcast %cst_20 : f32 to vector<4x256xf32>
      %cst_21 = arith.constant 0.000000e+00 : f32
      %59 = vector.broadcast %cst_21 : f32 to vector<2x4x32xf32>
      %60 = vector.extract_strided_slice %40 {offsets = [0, 0, 0], sizes = [2, 4, 224], strides = [1, 1, 1]} : vector<2x4x256xf32> to vector<2x4x224xf32>
      %61 = tpu.concatenate %59, %60 in 2 : vector<2x4x32xf32>, vector<2x4x224xf32> -> vector<2x4x256xf32>
      %62 = vector.extract_strided_slice %61 {offsets = [0, 0, 0], sizes = [1, 4, 256], strides = [1, 1, 1]} : vector<2x4x256xf32> to vector<1x4x256xf32>
      %63 = vector.shape_cast %62 : vector<1x4x256xf32> to vector<4x256xf32>
      %c0_22 = arith.constant 0 : index
      %c0_23 = arith.constant 0 : index
      %c0_24 = arith.constant 0 : index
      %c0_25 = arith.constant 0 : index
      %64 = vector.load %arg3[%c0_22, %c0_23, %c0_24, %c0_25] : memref<1x36x4x1xf32, #tpu.memory_space<vmem>>, vector<1x1x4x1xf32>
      %65 = vector.shape_cast %64 : vector<1x1x4x1xf32> to vector<4x1xf32>
      %66 = vector.broadcast %65 : vector<4x1xf32> to vector<4x256xf32>
      %67 = arith.mulf %63, %66 : vector<4x256xf32>
      %68 = arith.addf %57, %67 : vector<4x256xf32>
      %c0_26 = arith.constant 0 : index
      %c18 = arith.constant 18 : index
      %c0_27 = arith.constant 0 : index
      %c0_28 = arith.constant 0 : index
      %69 = vector.load %arg3[%c0_26, %c18, %c0_27, %c0_28] : memref<1x36x4x1xf32, #tpu.memory_space<vmem>>, vector<1x1x4x1xf32>
      %70 = vector.shape_cast %69 : vector<1x1x4x1xf32> to vector<4x1xf32>
      %71 = vector.broadcast %70 : vector<4x1xf32> to vector<4x256xf32>
      %72 = arith.mulf %63, %71 : vector<4x256xf32>
      %73 = arith.addf %58, %72 : vector<4x256xf32>
      %74 = vector.extract_strided_slice %61 {offsets = [1, 0, 0], sizes = [1, 4, 256], strides = [1, 1, 1]} : vector<2x4x256xf32> to vector<1x4x256xf32>
      %75 = vector.shape_cast %74 : vector<1x4x256xf32> to vector<4x256xf32>
      %c0_29 = arith.constant 0 : index
      %c9 = arith.constant 9 : index
      %c0_30 = arith.constant 0 : index
      %c0_31 = arith.constant 0 : index
      %76 = vector.load %arg3[%c0_29, %c9, %c0_30, %c0_31] : memref<1x36x4x1xf32, #tpu.memory_space<vmem>>, vector<1x1x4x1xf32>
      %77 = vector.shape_cast %76 : vector<1x1x4x1xf32> to vector<4x1xf32>
      %78 = vector.broadcast %77 : vector<4x1xf32> to vector<4x256xf32>
      %79 = arith.mulf %75, %78 : vector<4x256xf32>
      %80 = arith.addf %68, %79 : vector<4x256xf32>
      %c0_32 = arith.constant 0 : index
      %c27 = arith.constant 27 : index
      %c0_33 = arith.constant 0 : index
      %c0_34 = arith.constant 0 : index
      %81 = vector.load %arg3[%c0_32, %c27, %c0_33, %c0_34] : memref<1x36x4x1xf32, #tpu.memory_space<vmem>>, vector<1x1x4x1xf32>
      %82 = vector.shape_cast %81 : vector<1x1x4x1xf32> to vector<4x1xf32>
      %83 = vector.broadcast %82 : vector<4x1xf32> to vector<4x256xf32>
      %84 = arith.mulf %75, %83 : vector<4x256xf32>
      %85 = arith.addf %73, %84 : vector<4x256xf32>
      %cst_35 = arith.constant 0.000000e+00 : f32
      %86 = vector.broadcast %cst_35 : f32 to vector<2x4x32xf32>
      %87 = vector.extract_strided_slice %1 {offsets = [0, 0, 0], sizes = [2, 4, 224], strides = [1, 1, 1]} : vector<2x4x256xf32> to vector<2x4x224xf32>
      %88 = tpu.concatenate %86, %87 in 2 : vector<2x4x32xf32>, vector<2x4x224xf32> -> vector<2x4x256xf32>
      %89 = vector.extract_strided_slice %88 {offsets = [0, 0, 0], sizes = [1, 4, 256], strides = [1, 1, 1]} : vector<2x4x256xf32> to vector<1x4x256xf32>
      %90 = vector.shape_cast %89 : vector<1x4x256xf32> to vector<4x256xf32>
      %c0_36 = arith.constant 0 : index
      %c1 = arith.constant 1 : index
      %c0_37 = arith.constant 0 : index
      %c0_38 = arith.constant 0 : index
      %91 = vector.load %arg3[%c0_36, %c1, %c0_37, %c0_38] : memref<1x36x4x1xf32, #tpu.memory_space<vmem>>, vector<1x1x4x1xf32>
      %92 = vector.shape_cast %91 : vector<1x1x4x1xf32> to vector<4x1xf32>
      %93 = vector.broadcast %92 : vector<4x1xf32> to vector<4x256xf32>
      %94 = arith.mulf %90, %93 : vector<4x256xf32>
      %95 = arith.addf %80, %94 : vector<4x256xf32>
      %c0_39 = arith.constant 0 : index
      %c19 = arith.constant 19 : index
      %c0_40 = arith.constant 0 : index
      %c0_41 = arith.constant 0 : index
      %96 = vector.load %arg3[%c0_39, %c19, %c0_40, %c0_41] : memref<1x36x4x1xf32, #tpu.memory_space<vmem>>, vector<1x1x4x1xf32>
      %97 = vector.shape_cast %96 : vector<1x1x4x1xf32> to vector<4x1xf32>
      %98 = vector.broadcast %97 : vector<4x1xf32> to vector<4x256xf32>
      %99 = arith.mulf %90, %98 : vector<4x256xf32>
      %100 = arith.addf %85, %99 : vector<4x256xf32>
      %101 = vector.extract_strided_slice %88 {offsets = [1, 0, 0], sizes = [1, 4, 256], strides = [1, 1, 1]} : vector<2x4x256xf32> to vector<1x4x256xf32>
      %102 = vector.shape_cast %101 : vector<1x4x256xf32> to vector<4x256xf32>
      %c0_42 = arith.constant 0 : index
      %c10 = arith.constant 10 : index
      %c0_43 = arith.constant 0 : index
      %c0_44 = arith.constant 0 : index
      %103 = vector.load %arg3[%c0_42, %c10, %c0_43, %c0_44] : memref<1x36x4x1xf32, #tpu.memory_space<vmem>>, vector<1x1x4x1xf32>
      %104 = vector.shape_cast %103 : vector<1x1x4x1xf32> to vector<4x1xf32>
      %105 = vector.broadcast %104 : vector<4x1xf32> to vector<4x256xf32>
      %106 = arith.mulf %102, %105 : vector<4x256xf32>
      %107 = arith.addf %95, %106 : vector<4x256xf32>
      %c0_45 = arith.constant 0 : index
      %c28 = arith.constant 28 : index
      %c0_46 = arith.constant 0 : index
      %c0_47 = arith.constant 0 : index
      %108 = vector.load %arg3[%c0_45, %c28, %c0_46, %c0_47] : memref<1x36x4x1xf32, #tpu.memory_space<vmem>>, vector<1x1x4x1xf32>
      %109 = vector.shape_cast %108 : vector<1x1x4x1xf32> to vector<4x1xf32>
      %110 = vector.broadcast %109 : vector<4x1xf32> to vector<4x256xf32>
      %111 = arith.mulf %102, %110 : vector<4x256xf32>
      %112 = arith.addf %100, %111 : vector<4x256xf32>
      %cst_48 = arith.constant 0.000000e+00 : f32
      %113 = vector.broadcast %cst_48 : f32 to vector<2x4x32xf32>
      %114 = vector.extract_strided_slice %56 {offsets = [0, 0, 0], sizes = [2, 4, 224], strides = [1, 1, 1]} : vector<2x4x256xf32> to vector<2x4x224xf32>
      %115 = tpu.concatenate %113, %114 in 2 : vector<2x4x32xf32>, vector<2x4x224xf32> -> vector<2x4x256xf32>
      %116 = vector.extract_strided_slice %115 {offsets = [0, 0, 0], sizes = [1, 4, 256], strides = [1, 1, 1]} : vector<2x4x256xf32> to vector<1x4x256xf32>
      %117 = vector.shape_cast %116 : vector<1x4x256xf32> to vector<4x256xf32>
      %c0_49 = arith.constant 0 : index
      %c2 = arith.constant 2 : index
      %c0_50 = arith.constant 0 : index
      %c0_51 = arith.constant 0 : index
      %118 = vector.load %arg3[%c0_49, %c2, %c0_50, %c0_51] : memref<1x36x4x1xf32, #tpu.memory_space<vmem>>, vector<1x1x4x1xf32>
      %119 = vector.shape_cast %118 : vector<1x1x4x1xf32> to vector<4x1xf32>
      %120 = vector.broadcast %119 : vector<4x1xf32> to vector<4x256xf32>
      %121 = arith.mulf %117, %120 : vector<4x256xf32>
      %122 = arith.addf %107, %121 : vector<4x256xf32>
      %c0_52 = arith.constant 0 : index
      %c20 = arith.constant 20 : index
      %c0_53 = arith.constant 0 : index
      %c0_54 = arith.constant 0 : index
      %123 = vector.load %arg3[%c0_52, %c20, %c0_53, %c0_54] : memref<1x36x4x1xf32, #tpu.memory_space<vmem>>, vector<1x1x4x1xf32>
      %124 = vector.shape_cast %123 : vector<1x1x4x1xf32> to vector<4x1xf32>
      %125 = vector.broadcast %124 : vector<4x1xf32> to vector<4x256xf32>
      %126 = arith.mulf %117, %125 : vector<4x256xf32>
      %127 = arith.addf %112, %126 : vector<4x256xf32>
      %128 = vector.extract_strided_slice %115 {offsets = [1, 0, 0], sizes = [1, 4, 256], strides = [1, 1, 1]} : vector<2x4x256xf32> to vector<1x4x256xf32>
      %129 = vector.shape_cast %128 : vector<1x4x256xf32> to vector<4x256xf32>
      %c0_55 = arith.constant 0 : index
      %c11 = arith.constant 11 : index
      %c0_56 = arith.constant 0 : index
      %c0_57 = arith.constant 0 : index
      %130 = vector.load %arg3[%c0_55, %c11, %c0_56, %c0_57] : memref<1x36x4x1xf32, #tpu.memory_space<vmem>>, vector<1x1x4x1xf32>
      %131 = vector.shape_cast %130 : vector<1x1x4x1xf32> to vector<4x1xf32>
      %132 = vector.broadcast %131 : vector<4x1xf32> to vector<4x256xf32>
      %133 = arith.mulf %129, %132 : vector<4x256xf32>
      %134 = arith.addf %122, %133 : vector<4x256xf32>
      %c0_58 = arith.constant 0 : index
      %c29 = arith.constant 29 : index
      %c0_59 = arith.constant 0 : index
      %c0_60 = arith.constant 0 : index
      %135 = vector.load %arg3[%c0_58, %c29, %c0_59, %c0_60] : memref<1x36x4x1xf32, #tpu.memory_space<vmem>>, vector<1x1x4x1xf32>
      %136 = vector.shape_cast %135 : vector<1x1x4x1xf32> to vector<4x1xf32>
      %137 = vector.broadcast %136 : vector<4x1xf32> to vector<4x256xf32>
      %138 = arith.mulf %129, %137 : vector<4x256xf32>
      %139 = arith.addf %127, %138 : vector<4x256xf32>
      %140 = vector.extract_strided_slice %40 {offsets = [0, 0, 0], sizes = [1, 4, 256], strides = [1, 1, 1]} : vector<2x4x256xf32> to vector<1x4x256xf32>
      %141 = vector.shape_cast %140 : vector<1x4x256xf32> to vector<4x256xf32>
      %c0_61 = arith.constant 0 : index
      %c3 = arith.constant 3 : index
      %c0_62 = arith.constant 0 : index
      %c0_63 = arith.constant 0 : index
      %142 = vector.load %arg3[%c0_61, %c3, %c0_62, %c0_63] : memref<1x36x4x1xf32, #tpu.memory_space<vmem>>, vector<1x1x4x1xf32>
      %143 = vector.shape_cast %142 : vector<1x1x4x1xf32> to vector<4x1xf32>
      %144 = vector.broadcast %143 : vector<4x1xf32> to vector<4x256xf32>
      %145 = arith.mulf %141, %144 : vector<4x256xf32>
      %146 = arith.addf %134, %145 : vector<4x256xf32>
      %c0_64 = arith.constant 0 : index
      %c21 = arith.constant 21 : index
      %c0_65 = arith.constant 0 : index
      %c0_66 = arith.constant 0 : index
      %147 = vector.load %arg3[%c0_64, %c21, %c0_65, %c0_66] : memref<1x36x4x1xf32, #tpu.memory_space<vmem>>, vector<1x1x4x1xf32>
      %148 = vector.shape_cast %147 : vector<1x1x4x1xf32> to vector<4x1xf32>
      %149 = vector.broadcast %148 : vector<4x1xf32> to vector<4x256xf32>
      %150 = arith.mulf %141, %149 : vector<4x256xf32>
      %151 = arith.addf %139, %150 : vector<4x256xf32>
      %152 = vector.extract_strided_slice %40 {offsets = [1, 0, 0], sizes = [1, 4, 256], strides = [1, 1, 1]} : vector<2x4x256xf32> to vector<1x4x256xf32>
      %153 = vector.shape_cast %152 : vector<1x4x256xf32> to vector<4x256xf32>
      %c0_67 = arith.constant 0 : index
      %c12 = arith.constant 12 : index
      %c0_68 = arith.constant 0 : index
      %c0_69 = arith.constant 0 : index
      %154 = vector.load %arg3[%c0_67, %c12, %c0_68, %c0_69] : memref<1x36x4x1xf32, #tpu.memory_space<vmem>>, vector<1x1x4x1xf32>
      %155 = vector.shape_cast %154 : vector<1x1x4x1xf32> to vector<4x1xf32>
      %156 = vector.broadcast %155 : vector<4x1xf32> to vector<4x256xf32>
      %157 = arith.mulf %153, %156 : vector<4x256xf32>
      %158 = arith.addf %146, %157 : vector<4x256xf32>
      %c0_70 = arith.constant 0 : index
      %c30 = arith.constant 30 : index
      %c0_71 = arith.constant 0 : index
      %c0_72 = arith.constant 0 : index
      %159 = vector.load %arg3[%c0_70, %c30, %c0_71, %c0_72] : memref<1x36x4x1xf32, #tpu.memory_space<vmem>>, vector<1x1x4x1xf32>
      %160 = vector.shape_cast %159 : vector<1x1x4x1xf32> to vector<4x1xf32>
      %161 = vector.broadcast %160 : vector<4x1xf32> to vector<4x256xf32>
      %162 = arith.mulf %153, %161 : vector<4x256xf32>
      %163 = arith.addf %151, %162 : vector<4x256xf32>
      %164 = vector.extract_strided_slice %1 {offsets = [0, 0, 0], sizes = [1, 4, 256], strides = [1, 1, 1]} : vector<2x4x256xf32> to vector<1x4x256xf32>
      %165 = vector.shape_cast %164 : vector<1x4x256xf32> to vector<4x256xf32>
      %c0_73 = arith.constant 0 : index
      %c4 = arith.constant 4 : index
      %c0_74 = arith.constant 0 : index
      %c0_75 = arith.constant 0 : index
      %166 = vector.load %arg3[%c0_73, %c4, %c0_74, %c0_75] : memref<1x36x4x1xf32, #tpu.memory_space<vmem>>, vector<1x1x4x1xf32>
      %167 = vector.shape_cast %166 : vector<1x1x4x1xf32> to vector<4x1xf32>
      %168 = vector.broadcast %167 : vector<4x1xf32> to vector<4x256xf32>
      %169 = arith.mulf %165, %168 : vector<4x256xf32>
      %170 = arith.addf %158, %169 : vector<4x256xf32>
      %c0_76 = arith.constant 0 : index
      %c22 = arith.constant 22 : index
      %c0_77 = arith.constant 0 : index
      %c0_78 = arith.constant 0 : index
      %171 = vector.load %arg3[%c0_76, %c22, %c0_77, %c0_78] : memref<1x36x4x1xf32, #tpu.memory_space<vmem>>, vector<1x1x4x1xf32>
      %172 = vector.shape_cast %171 : vector<1x1x4x1xf32> to vector<4x1xf32>
      %173 = vector.broadcast %172 : vector<4x1xf32> to vector<4x256xf32>
      %174 = arith.mulf %165, %173 : vector<4x256xf32>
      %175 = arith.addf %163, %174 : vector<4x256xf32>
      %176 = vector.extract_strided_slice %1 {offsets = [1, 0, 0], sizes = [1, 4, 256], strides = [1, 1, 1]} : vector<2x4x256xf32> to vector<1x4x256xf32>
      %177 = vector.shape_cast %176 : vector<1x4x256xf32> to vector<4x256xf32>
      %c0_79 = arith.constant 0 : index
      %c13 = arith.constant 13 : index
      %c0_80 = arith.constant 0 : index
      %c0_81 = arith.constant 0 : index
      %178 = vector.load %arg3[%c0_79, %c13, %c0_80, %c0_81] : memref<1x36x4x1xf32, #tpu.memory_space<vmem>>, vector<1x1x4x1xf32>
      %179 = vector.shape_cast %178 : vector<1x1x4x1xf32> to vector<4x1xf32>
      %180 = vector.broadcast %179 : vector<4x1xf32> to vector<4x256xf32>
      %181 = arith.mulf %177, %180 : vector<4x256xf32>
      %182 = arith.addf %170, %181 : vector<4x256xf32>
      %c0_82 = arith.constant 0 : index
      %c31 = arith.constant 31 : index
      %c0_83 = arith.constant 0 : index
      %c0_84 = arith.constant 0 : index
      %183 = vector.load %arg3[%c0_82, %c31, %c0_83, %c0_84] : memref<1x36x4x1xf32, #tpu.memory_space<vmem>>, vector<1x1x4x1xf32>
      %184 = vector.shape_cast %183 : vector<1x1x4x1xf32> to vector<4x1xf32>
      %185 = vector.broadcast %184 : vector<4x1xf32> to vector<4x256xf32>
      %186 = arith.mulf %177, %185 : vector<4x256xf32>
      %187 = arith.addf %175, %186 : vector<4x256xf32>
      %188 = vector.extract_strided_slice %56 {offsets = [0, 0, 0], sizes = [1, 4, 256], strides = [1, 1, 1]} : vector<2x4x256xf32> to vector<1x4x256xf32>
      %189 = vector.shape_cast %188 : vector<1x4x256xf32> to vector<4x256xf32>
      %c0_85 = arith.constant 0 : index
      %c5 = arith.constant 5 : index
      %c0_86 = arith.constant 0 : index
      %c0_87 = arith.constant 0 : index
      %190 = vector.load %arg3[%c0_85, %c5, %c0_86, %c0_87] : memref<1x36x4x1xf32, #tpu.memory_space<vmem>>, vector<1x1x4x1xf32>
      %191 = vector.shape_cast %190 : vector<1x1x4x1xf32> to vector<4x1xf32>
      %192 = vector.broadcast %191 : vector<4x1xf32> to vector<4x256xf32>
      %193 = arith.mulf %189, %192 : vector<4x256xf32>
      %194 = arith.addf %182, %193 : vector<4x256xf32>
      %c0_88 = arith.constant 0 : index
      %c23 = arith.constant 23 : index
      %c0_89 = arith.constant 0 : index
      %c0_90 = arith.constant 0 : index
      %195 = vector.load %arg3[%c0_88, %c23, %c0_89, %c0_90] : memref<1x36x4x1xf32, #tpu.memory_space<vmem>>, vector<1x1x4x1xf32>
      %196 = vector.shape_cast %195 : vector<1x1x4x1xf32> to vector<4x1xf32>
      %197 = vector.broadcast %196 : vector<4x1xf32> to vector<4x256xf32>
      %198 = arith.mulf %189, %197 : vector<4x256xf32>
      %199 = arith.addf %187, %198 : vector<4x256xf32>
      %200 = vector.extract_strided_slice %56 {offsets = [1, 0, 0], sizes = [1, 4, 256], strides = [1, 1, 1]} : vector<2x4x256xf32> to vector<1x4x256xf32>
      %201 = vector.shape_cast %200 : vector<1x4x256xf32> to vector<4x256xf32>
      %c0_91 = arith.constant 0 : index
      %c14 = arith.constant 14 : index
      %c0_92 = arith.constant 0 : index
      %c0_93 = arith.constant 0 : index
      %202 = vector.load %arg3[%c0_91, %c14, %c0_92, %c0_93] : memref<1x36x4x1xf32, #tpu.memory_space<vmem>>, vector<1x1x4x1xf32>
      %203 = vector.shape_cast %202 : vector<1x1x4x1xf32> to vector<4x1xf32>
      %204 = vector.broadcast %203 : vector<4x1xf32> to vector<4x256xf32>
      %205 = arith.mulf %201, %204 : vector<4x256xf32>
      %206 = arith.addf %194, %205 : vector<4x256xf32>
      %c0_94 = arith.constant 0 : index
      %c32 = arith.constant 32 : index
      %c0_95 = arith.constant 0 : index
      %c0_96 = arith.constant 0 : index
      %207 = vector.load %arg3[%c0_94, %c32, %c0_95, %c0_96] : memref<1x36x4x1xf32, #tpu.memory_space<vmem>>, vector<1x1x4x1xf32>
      %208 = vector.shape_cast %207 : vector<1x1x4x1xf32> to vector<4x1xf32>
      %209 = vector.broadcast %208 : vector<4x1xf32> to vector<4x256xf32>
      %210 = arith.mulf %201, %209 : vector<4x256xf32>
      %211 = arith.addf %199, %210 : vector<4x256xf32>
      %cst_97 = arith.constant 0.000000e+00 : f32
      %212 = vector.broadcast %cst_97 : f32 to vector<2x4x32xf32>
      %213 = vector.extract_strided_slice %40 {offsets = [0, 0, 32], sizes = [2, 4, 224], strides = [1, 1, 1]} : vector<2x4x256xf32> to vector<2x4x224xf32>
      %214 = tpu.concatenate %213, %212 in 2 : vector<2x4x224xf32>, vector<2x4x32xf32> -> vector<2x4x256xf32>
      %215 = vector.extract_strided_slice %214 {offsets = [0, 0, 0], sizes = [1, 4, 256], strides = [1, 1, 1]} : vector<2x4x256xf32> to vector<1x4x256xf32>
      %216 = vector.shape_cast %215 : vector<1x4x256xf32> to vector<4x256xf32>
      %c0_98 = arith.constant 0 : index
      %c6 = arith.constant 6 : index
      %c0_99 = arith.constant 0 : index
      %c0_100 = arith.constant 0 : index
      %217 = vector.load %arg3[%c0_98, %c6, %c0_99, %c0_100] : memref<1x36x4x1xf32, #tpu.memory_space<vmem>>, vector<1x1x4x1xf32>
      %218 = vector.shape_cast %217 : vector<1x1x4x1xf32> to vector<4x1xf32>
      %219 = vector.broadcast %218 : vector<4x1xf32> to vector<4x256xf32>
      %220 = arith.mulf %216, %219 : vector<4x256xf32>
      %221 = arith.addf %206, %220 : vector<4x256xf32>
      %c0_101 = arith.constant 0 : index
      %c24 = arith.constant 24 : index
      %c0_102 = arith.constant 0 : index
      %c0_103 = arith.constant 0 : index
      %222 = vector.load %arg3[%c0_101, %c24, %c0_102, %c0_103] : memref<1x36x4x1xf32, #tpu.memory_space<vmem>>, vector<1x1x4x1xf32>
      %223 = vector.shape_cast %222 : vector<1x1x4x1xf32> to vector<4x1xf32>
      %224 = vector.broadcast %223 : vector<4x1xf32> to vector<4x256xf32>
      %225 = arith.mulf %216, %224 : vector<4x256xf32>
      %226 = arith.addf %211, %225 : vector<4x256xf32>
      %227 = vector.extract_strided_slice %214 {offsets = [1, 0, 0], sizes = [1, 4, 256], strides = [1, 1, 1]} : vector<2x4x256xf32> to vector<1x4x256xf32>
      %228 = vector.shape_cast %227 : vector<1x4x256xf32> to vector<4x256xf32>
      %c0_104 = arith.constant 0 : index
      %c15 = arith.constant 15 : index
      %c0_105 = arith.constant 0 : index
      %c0_106 = arith.constant 0 : index
      %229 = vector.load %arg3[%c0_104, %c15, %c0_105, %c0_106] : memref<1x36x4x1xf32, #tpu.memory_space<vmem>>, vector<1x1x4x1xf32>
      %230 = vector.shape_cast %229 : vector<1x1x4x1xf32> to vector<4x1xf32>
      %231 = vector.broadcast %230 : vector<4x1xf32> to vector<4x256xf32>
      %232 = arith.mulf %228, %231 : vector<4x256xf32>
      %233 = arith.addf %221, %232 : vector<4x256xf32>
      %c0_107 = arith.constant 0 : index
      %c33 = arith.constant 33 : index
      %c0_108 = arith.constant 0 : index
      %c0_109 = arith.constant 0 : index
      %234 = vector.load %arg3[%c0_107, %c33, %c0_108, %c0_109] : memref<1x36x4x1xf32, #tpu.memory_space<vmem>>, vector<1x1x4x1xf32>
      %235 = vector.shape_cast %234 : vector<1x1x4x1xf32> to vector<4x1xf32>
      %236 = vector.broadcast %235 : vector<4x1xf32> to vector<4x256xf32>
      %237 = arith.mulf %228, %236 : vector<4x256xf32>
      %238 = arith.addf %226, %237 : vector<4x256xf32>
      %cst_110 = arith.constant 0.000000e+00 : f32
      %239 = vector.broadcast %cst_110 : f32 to vector<2x4x32xf32>
      %240 = vector.extract_strided_slice %1 {offsets = [0, 0, 32], sizes = [2, 4, 224], strides = [1, 1, 1]} : vector<2x4x256xf32> to vector<2x4x224xf32>
      %241 = tpu.concatenate %240, %239 in 2 : vector<2x4x224xf32>, vector<2x4x32xf32> -> vector<2x4x256xf32>
      %242 = vector.extract_strided_slice %241 {offsets = [0, 0, 0], sizes = [1, 4, 256], strides = [1, 1, 1]} : vector<2x4x256xf32> to vector<1x4x256xf32>
      %243 = vector.shape_cast %242 : vector<1x4x256xf32> to vector<4x256xf32>
      %c0_111 = arith.constant 0 : index
      %c7 = arith.constant 7 : index
      %c0_112 = arith.constant 0 : index
      %c0_113 = arith.constant 0 : index
      %244 = vector.load %arg3[%c0_111, %c7, %c0_112, %c0_113] : memref<1x36x4x1xf32, #tpu.memory_space<vmem>>, vector<1x1x4x1xf32>
      %245 = vector.shape_cast %244 : vector<1x1x4x1xf32> to vector<4x1xf32>
      %246 = vector.broadcast %245 : vector<4x1xf32> to vector<4x256xf32>
      %247 = arith.mulf %243, %246 : vector<4x256xf32>
      %248 = arith.addf %233, %247 : vector<4x256xf32>
      %c0_114 = arith.constant 0 : index
      %c25 = arith.constant 25 : index
      %c0_115 = arith.constant 0 : index
      %c0_116 = arith.constant 0 : index
      %249 = vector.load %arg3[%c0_114, %c25, %c0_115, %c0_116] : memref<1x36x4x1xf32, #tpu.memory_space<vmem>>, vector<1x1x4x1xf32>
      %250 = vector.shape_cast %249 : vector<1x1x4x1xf32> to vector<4x1xf32>
      %251 = vector.broadcast %250 : vector<4x1xf32> to vector<4x256xf32>
      %252 = arith.mulf %243, %251 : vector<4x256xf32>
      %253 = arith.addf %238, %252 : vector<4x256xf32>
      %254 = vector.extract_strided_slice %241 {offsets = [1, 0, 0], sizes = [1, 4, 256], strides = [1, 1, 1]} : vector<2x4x256xf32> to vector<1x4x256xf32>
      %255 = vector.shape_cast %254 : vector<1x4x256xf32> to vector<4x256xf32>
      %c0_117 = arith.constant 0 : index
      %c16 = arith.constant 16 : index
      %c0_118 = arith.constant 0 : index
      %c0_119 = arith.constant 0 : index
      %256 = vector.load %arg3[%c0_117, %c16, %c0_118, %c0_119] : memref<1x36x4x1xf32, #tpu.memory_space<vmem>>, vector<1x1x4x1xf32>
      %257 = vector.shape_cast %256 : vector<1x1x4x1xf32> to vector<4x1xf32>
      %258 = vector.broadcast %257 : vector<4x1xf32> to vector<4x256xf32>
      %259 = arith.mulf %255, %258 : vector<4x256xf32>
      %260 = arith.addf %248, %259 : vector<4x256xf32>
      %c0_120 = arith.constant 0 : index
      %c34 = arith.constant 34 : index
      %c0_121 = arith.constant 0 : index
      %c0_122 = arith.constant 0 : index
      %261 = vector.load %arg3[%c0_120, %c34, %c0_121, %c0_122] : memref<1x36x4x1xf32, #tpu.memory_space<vmem>>, vector<1x1x4x1xf32>
      %262 = vector.shape_cast %261 : vector<1x1x4x1xf32> to vector<4x1xf32>
      %263 = vector.broadcast %262 : vector<4x1xf32> to vector<4x256xf32>
      %264 = arith.mulf %255, %263 : vector<4x256xf32>
      %265 = arith.addf %253, %264 : vector<4x256xf32>
      %cst_123 = arith.constant 0.000000e+00 : f32
      %266 = vector.broadcast %cst_123 : f32 to vector<2x4x32xf32>
      %267 = vector.extract_strided_slice %56 {offsets = [0, 0, 32], sizes = [2, 4, 224], strides = [1, 1, 1]} : vector<2x4x256xf32> to vector<2x4x224xf32>
      %268 = tpu.concatenate %267, %266 in 2 : vector<2x4x224xf32>, vector<2x4x32xf32> -> vector<2x4x256xf32>
      %269 = vector.extract_strided_slice %268 {offsets = [0, 0, 0], sizes = [1, 4, 256], strides = [1, 1, 1]} : vector<2x4x256xf32> to vector<1x4x256xf32>
      %270 = vector.shape_cast %269 : vector<1x4x256xf32> to vector<4x256xf32>
      %c0_124 = arith.constant 0 : index
      %c8 = arith.constant 8 : index
      %c0_125 = arith.constant 0 : index
      %c0_126 = arith.constant 0 : index
      %271 = vector.load %arg3[%c0_124, %c8, %c0_125, %c0_126] : memref<1x36x4x1xf32, #tpu.memory_space<vmem>>, vector<1x1x4x1xf32>
      %272 = vector.shape_cast %271 : vector<1x1x4x1xf32> to vector<4x1xf32>
      %273 = vector.broadcast %272 : vector<4x1xf32> to vector<4x256xf32>
      %274 = arith.mulf %270, %273 : vector<4x256xf32>
      %275 = arith.addf %260, %274 : vector<4x256xf32>
      %c0_127 = arith.constant 0 : index
      %c26 = arith.constant 26 : index
      %c0_128 = arith.constant 0 : index
      %c0_129 = arith.constant 0 : index
      %276 = vector.load %arg3[%c0_127, %c26, %c0_128, %c0_129] : memref<1x36x4x1xf32, #tpu.memory_space<vmem>>, vector<1x1x4x1xf32>
      %277 = vector.shape_cast %276 : vector<1x1x4x1xf32> to vector<4x1xf32>
      %278 = vector.broadcast %277 : vector<4x1xf32> to vector<4x256xf32>
      %279 = arith.mulf %270, %278 : vector<4x256xf32>
      %280 = arith.addf %265, %279 : vector<4x256xf32>
      %281 = vector.extract_strided_slice %268 {offsets = [1, 0, 0], sizes = [1, 4, 256], strides = [1, 1, 1]} : vector<2x4x256xf32> to vector<1x4x256xf32>
      %282 = vector.shape_cast %281 : vector<1x4x256xf32> to vector<4x256xf32>
      %c0_130 = arith.constant 0 : index
      %c17 = arith.constant 17 : index
      %c0_131 = arith.constant 0 : index
      %c0_132 = arith.constant 0 : index
      %283 = vector.load %arg3[%c0_130, %c17, %c0_131, %c0_132] : memref<1x36x4x1xf32, #tpu.memory_space<vmem>>, vector<1x1x4x1xf32>
      %284 = vector.shape_cast %283 : vector<1x1x4x1xf32> to vector<4x1xf32>
      %285 = vector.broadcast %284 : vector<4x1xf32> to vector<4x256xf32>
      %286 = arith.mulf %282, %285 : vector<4x256xf32>
      %287 = arith.addf %275, %286 : vector<4x256xf32>
      %c0_133 = arith.constant 0 : index
      %c35 = arith.constant 35 : index
      %c0_134 = arith.constant 0 : index
      %c0_135 = arith.constant 0 : index
      %288 = vector.load %arg3[%c0_133, %c35, %c0_134, %c0_135] : memref<1x36x4x1xf32, #tpu.memory_space<vmem>>, vector<1x1x4x1xf32>
      %289 = vector.shape_cast %288 : vector<1x1x4x1xf32> to vector<4x1xf32>
      %290 = vector.broadcast %289 : vector<4x1xf32> to vector<4x256xf32>
      %291 = arith.mulf %282, %290 : vector<4x256xf32>
      %292 = arith.addf %280, %291 : vector<4x256xf32>
      %c0_136 = arith.constant 0 : index
      %c0_137 = arith.constant 0 : index
      %c0_138 = arith.constant 0 : index
      %c0_139 = arith.constant 0 : index
      %293 = vector.load %arg4[%c0_136, %c0_137, %c0_138, %c0_139] : memref<1x2x4x1xf32, #tpu.memory_space<vmem>>, vector<1x1x4x1xf32>
      %294 = vector.shape_cast %293 : vector<1x1x4x1xf32> to vector<4x1xf32>
      %295 = vector.broadcast %294 : vector<4x1xf32> to vector<4x256xf32>
      %296 = arith.addf %287, %295 : vector<4x256xf32>
      %c0_140 = arith.constant 0 : index
      %c0_141 = arith.constant 0 : index
      %c0_142 = arith.constant 0 : index
      %c0_143 = arith.constant 0 : index
      %297 = vector.load %arg5[%c0_140, %c0_141, %c0_142, %c0_143] : memref<1x2x4x256xf32, #tpu.memory_space<vmem>>, vector<1x1x4x256xf32>
      %298 = vector.shape_cast %297 : vector<1x1x4x256xf32> to vector<4x256xf32>
      %299 = vector.shape_cast %296 : vector<4x256xf32> to vector<1x1x4x256xf32>
      tpu.vector_store %arg5[%c0_140, %c0_141, %c0_142, %c0_143], %299 {strides = array<i32>} : memref<1x2x4x256xf32, #tpu.memory_space<vmem>>, vector<1x1x4x256xf32>,
      %c0_144 = arith.constant 0 : index
      %c1_145 = arith.constant 1 : index
      %c0_146 = arith.constant 0 : index
      %c0_147 = arith.constant 0 : index
      %300 = vector.load %arg4[%c0_144, %c1_145, %c0_146, %c0_147] : memref<1x2x4x1xf32, #tpu.memory_space<vmem>>, vector<1x1x4x1xf32>
      %301 = vector.shape_cast %300 : vector<1x1x4x1xf32> to vector<4x1xf32>
      %302 = vector.broadcast %301 : vector<4x1xf32> to vector<4x256xf32>
      %303 = arith.addf %292, %302 : vector<4x256xf32>
      %c0_148 = arith.constant 0 : index
      %c1_149 = arith.constant 1 : index
      %c0_150 = arith.constant 0 : index
      %c0_151 = arith.constant 0 : index
      %304 = vector.load %arg5[%c0_148, %c1_149, %c0_150, %c0_151] : memref<1x2x4x256xf32, #tpu.memory_space<vmem>>, vector<1x1x4x256xf32>
      %305 = vector.shape_cast %304 : vector<1x1x4x256xf32> to vector<4x256xf32>
      %306 = vector.shape_cast %303 : vector<4x256xf32> to vector<1x1x4x256xf32>
      tpu.vector_store %arg5[%c0_148, %c1_149, %c0_150, %c0_151], %306 {strides = array<i32>} : memref<1x2x4x256xf32, #tpu.memory_space<vmem>>, vector<1x1x4x256xf32>,
    } else {
    }
    return
  }
  func.func @transform_0(%arg0: i32, %arg1: i32) -> (i32, i32, i32, i32) {
    %c0_i32 = arith.constant 0 : i32
    %c0_i32_0 = arith.constant 0 : i32
    %c0_i32_1 = arith.constant 0 : i32
    return %arg0, %c0_i32, %arg1, %c0_i32_0 : i32, i32, i32, i32
  }
  func.func @transform_1(%arg0: i32, %arg1: i32) -> (i32, i32, i32, i32) {
    %c0_i32 = arith.constant 0 : i32
    %c0_i32_0 = arith.constant 0 : i32
    %c0_i32_1 = arith.constant 0 : i32
    return %arg0, %c0_i32, %arg1, %c0_i32_0 : i32, i32, i32, i32
  }
  func.func @transform_2(%arg0: i32, %arg1: i32) -> (i32, i32, i32, i32) {
    %c0_i32 = arith.constant 0 : i32
    %c0_i32_0 = arith.constant 0 : i32
    %c0_i32_1 = arith.constant 0 : i32
    return %arg0, %c0_i32, %arg1, %c0_i32_0 : i32, i32, i32, i32
  }
  func.func @transform_3(%arg0: i32, %arg1: i32) -> (i32, i32, i32, i32) {
    %c0_i32 = arith.constant 0 : i32
    %c0_i32_0 = arith.constant 0 : i32
    %c0_i32_1 = arith.constant 0 : i32
    return %arg0, %c0_i32, %arg1, %c0_i32_0 : i32, i32, i32, i32
  }
}

</mosaic_0001>

<bundles_post_ra>
// kernel: tpu_custom_call.1
= control target key start
LH: loop header
LB: loop body
LE: loop exit
PB: predicated region body
PF: predicated region fallthrough
CT: control target
= control target key end

     0   :  { %8 = vsyncpa [#allocation3], 0  ;;  %s2777_s0 = inlined_call_operand.vmem [shape: f32[2,2,4,256], index: 0, kind: input, shape index: {}]   ;;  %s2778_s1 = inlined_call_operand.vmem [shape: f32[2,36,4,1], index: 1, kind: input, shape index: {}]   ;;  %s2779_s2 = inlined_call_operand.vmem [shape: f32[2,2,4,1], index: 2, kind: input, shape index: {}]   ;;  %s2780_s3 = inlined_call_operand.hbm [shape: f32[2,2,4,256], index: 3, kind: output, shape index: {}]  }
   0x1   :  { %10 = vsyncpa [#allocation3 + $0x1], 0  ;;  %s1984_s12 = smov 0   ;;  %s1986_s13 = smov 0  }
   0x2   :  { %s1988_s14 = smov 0   ;;  %s1990_s15 = smov 0  }
   0x3   :  { %s1992_s16 = smov 0   ;;  %s1994_s17 = smov 0  }
   0x4 LB: > { %s1700_s18 = sadd.s32 4294967295, %s1947_s17   ;;  %s1701_s19 = sadd.s32 4294967294, %s1947_s17   ;;  %s1947_s17 = sphi %s1994_s17, %s16_s17   ;;  %s1943_s16 = sphi %s1992_s16, %s2850_s16   ;;  %s1939_s15 = sphi %s1990_s15, %s2849_s15   ;;  %s1935_s14 = sphi %s1988_s14, %s2848_s14   ;;  %s1931_s13 = sphi %s1986_s13, %s2847_s13   ;;  %s1927_s12 = sphi %s1984_s12, %s2846_s12  }
   0x5   : > { %s28_s20 = sadd.s32 1, %s1943_s16  ;;  %s121_s21 = sadd.s32 1, %s1935_s14 }
   0x6   : > { %p30_p0 = scmp.ge.s32.totalorder %s28_s20, 2  ;;  %p131_p1 = scmp.ne.s32.totalorder %s1935_s14, %s1931_s13 }
   0x7   : > { %p132_p2 = scmp.eq.s32.totalorder %s1700_s18, 1  ;;  %p137_p3 = scmp.ne.s32.totalorder %s1931_s13, %s1927_s12 }
   0x8   : > { %s2852_s20 = smov (%p30_p0, %s28_s20), 0  ;;  %p138_p5 = scmp.eq.s32.totalorder %s1701_s19, 1 }
   0x9   : > { %p2024_p4 = por %p132_p2, %p131_p1  ;;  %s116_s23 = ssub.s32 %s1943_s16, %s2852_s20 }
   0xa   : > { %p1704_p6 = scmp.ge.s32.totalorder %s1947_s17, 1  ;;  %p119_p7 = scmp.eq.s32.totalorder %s116_s23, 0 }
   0xb   : > { %p2031_p8 = por %p138_p5, %p137_p3  ;;  %p190_p9 = scmp.lt.s32.totalorder %s1947_s17, 3 }
   0xc   : > { %s2037_s25 = scalar_select %p119_p7, %s1935_s14, %s121_s21  }
   0xd   : > { %p191_p10 = pnand %p1704_p6, %p190_p9 }
   0xf   : > { %194 = sbr.rel (%p191_p10) target bundleno = 666 (0x29a), region = 32 }
  0x16   : > { %s231_s26 = sand.u32 1, %s1931_s13   ;;  %p234_p11 = scmp.lt.s32.totalorder %s1939_s15, 1  ;;  %v2781_v0 = vlaneseq }
  0x17   : > { %s1705_s27 = sshll.u32 %s231_s26, 4  ;;  %p1711_p12 = scmp.ne.s32.totalorder %s1939_s15, 0 }
  0x18   : > { %v262_v1 = vand.u32 127, %v2781_v0  ;;  %s235_s28 = scalar_select %p234_p11, %s1939_s15, 1 }
  0x19   : > { %s2066_s21 = scalar_lea.vmem [#allocation2], %s1705_s27  ;;  %291 = sbr.rel (%p1711_p12) target bundleno = 332 (0x14c), region = 36 }
  0x1a   : > { %v263_v2 = vadd.s32 128, %v262_v1  ;;  %v2045_v3 = vand.u32 15, %v262_v1  ;;  %s1792_s29 = sshll.u32 %s235_s28, 4  ;;  %s1795_s30 = smul.u32 144, %s235_s28 }
  0x1b   : > { %s242_s6 = scalar_lea.vmem %s2777_s0, %s1792_s29  ;;  %s1793_s7 = sshll.u32 %s235_s28, 3 }
  0x1c   : > { %2804 = vst [vmem:[#allocation5_spill] sm:$0xff] %v2045_v3  ;;  %v2050_v4 = vand.u32 15, %v263_v2  ;;  %s2055_s10 = scalar_lea.vmem %s2778_s1, %s1795_s30  ;;  %s2060_s19 = scalar_lea.vmem %s2779_s2, %s1793_s7  ;;  %v2062_v5 = vld [vmem:[%s242_s6] sm:$0xff]  ;;  %v2064_v6 = vld [vmem:[%s242_s6 + $0x8] sm:$0xff] }
  0x1e   : > { %2805 = vst [vmem:[#allocation6_spill] sm:$0xff] %v2050_v4 }
  0x20   : > { %s1949_s23 = smov 1   ;;  %v2073_v7 = vcombine.high %v2064_v6, %v2064_v6  ;;  %v2077_v8 = vcombine.high %v2062_v5, %v2062_v5  ;;  %v1950_v9 = vmov 0   ;;  %s1951_s27 = smov 127   ;;  %v1712_v10 = vld [vmem:[%s2055_s10 + $0x48] sm:$0xf]  ;;  %v313_v44 = vadd.s32 4294967295, %v2045_v3 }
  0x21   : > { %300 = vrot.lane.b32.xlu1 %v2064_v6, %s1949_s23  ;;  %296 = vrot.lane.b32.xlu0 %v2062_v5, %s1949_s23  ;;  %v383_v11 = vld [vmem:[%s2055_s10] sm:$0xf]  ;;  %v1713_v12 = vld [vmem:[%s2055_s10 + $0x24] sm:$0xf]  ;;  %s1952_s28 = smov 16   ;;  %vm304_vm0 = vcmask 7168  }
  0x22   : > { %1866 = vset.pattern.permute.xlu1 %v1950_v9  ;;  %1865 = vset.pattern.permute.xlu0 %v1950_v9  ;;  %v1714_v13 = vld [vmem:[%s2055_s10 + $0x6c] sm:$0xf]  ;;  %v1715_v14 = vld [vmem:[%s2055_s10 + $0x4] sm:$0xf]  ;;  %v1717_v16 = vld [vmem:[%s2055_s10 + $0x28] sm:$0xf] }
  0x23   : > { %v1716_v15 = vld [vmem:[%s2055_s10 + $0x4c] sm:$0xf]  ;;  %v1718_v17 = vld [vmem:[%s2055_s10 + $0x70] sm:$0xf]  ;;  %v1719_v18 = vld [vmem:[%s2055_s10 + $0x8] sm:$0xf] }
  0x24   : > { %v1720_v19 = vld [vmem:[%s2055_s10 + $0x50] sm:$0xf]  ;;  %v1721_v20 = vld [vmem:[%s2055_s10 + $0x2c] sm:$0xf]  ;;  %v1722_v21 = vld [vmem:[%s2055_s10 + $0x74] sm:$0xf] }
  0x25   : > { %302 = vrot.lane.b32.xlu1 %v2073_v7, %s1949_s23  ;;  %298 = vrot.lane.b32.xlu0 %v2077_v8, %s1949_s23  ;;  %v1723_v22 = vld [vmem:[%s2055_s10 + $0xc] sm:$0xf]  ;;  %v1724_v23 = vld [vmem:[%s2055_s10 + $0x54] sm:$0xf]  ;;  %vm315_vm1 = vcmp.ge.s32.totalorder %v313_v44, 0  ;;  %s1953_s29 = smov 112  }
  0x26   : > { %v1725_v24 = vld [vmem:[%s2055_s10 + $0x30] sm:$0xf]  ;;  %v1726_v25 = vld [vmem:[%s2055_s10 + $0x78] sm:$0xf]  ;;  %v1729_v28 = vld [vmem:[%s2055_s10 + $0x34] sm:$0xf] }
  0x27   : > { %v1727_v26 = vld [vmem:[%s2055_s10 + $0x10] sm:$0xf]  ;;  %v1728_v27 = vld [vmem:[%s2055_s10 + $0x58] sm:$0xf]  ;;  %v1730_v29 = vld [vmem:[%s2055_s10 + $0x7c] sm:$0xf] }
  0x28   : > { %v1731_v30 = vld [vmem:[%s2055_s10 + $0x14] sm:$0xf]  ;;  %v1732_v31 = vld [vmem:[%s2055_s10 + $0x5c] sm:$0xf]  ;;  %v1733_v32 = vld [vmem:[%s2055_s10 + $0x38] sm:$0xf] }
  0x29   : > { %331 = vrot.lane.b32.xlu1 %v2077_v8, %s1951_s27  ;;  %329 = vrot.lane.b32.xlu0 %v2062_v5, %s1951_s27  ;;  %v1734_v33 = vld [vmem:[%s2055_s10 + $0x80] sm:$0xf]  ;;  %v1735_v34 = vld [vmem:[%s2055_s10 + $0x18] sm:$0xf]  ;;  %v314_v50 = vadd.s32 4294967295, %v2050_v4  ;;  %v347_v51 = vadd.s32 1, %v2050_v4 }
  0x2a   : > { %v1736_v35 = vld [vmem:[%s2055_s10 + $0x60] sm:$0xf]  ;;  %v1737_v36 = vld [vmem:[%s2055_s10 + $0x3c] sm:$0xf]  ;;  %v1738_v37 = vld [vmem:[%s2055_s10 + $0x84] sm:$0xf] }
  0x2b   : > { %v1739_v38 = vld [vmem:[%s2055_s10 + $0x1c] sm:$0xf]  ;;  %v1740_v39 = vld [vmem:[%s2055_s10 + $0x64] sm:$0xf]  ;;  %v1741_v40 = vld [vmem:[%s2055_s10 + $0x40] sm:$0xf] }
  0x2c   : > { %v1742_v41 = vld [vmem:[%s2055_s10 + $0x88] sm:$0xf]  ;;  %v1743_v42 = vld [vmem:[%s2055_s10 + $0x20] sm:$0xf]  ;;  %vm337_vm2 = vcmask 1039360   ;;  %vm316_vm3 = vcmp.ge.s32.totalorder %v314_v50, 0 }
  0x2d   : > { %335 = vrot.lane.b32.xlu1 %v2073_v7, %s1951_s27  ;;  %333 = vrot.lane.b32.xlu0 %v2064_v6, %s1951_s27  ;;  %v1744_v43 = vld [vmem:[%s2055_s10 + $0x68] sm:$0xf]  ;;  %vm351_vm4 = vcmp.lt.s32.totalorder %v347_v51, 16  ;;  %v346_v62 = vadd.s32 1, %v2045_v3  ;;  %vm374_vm6 = vcmask 130048   ;;  %vm726_vm7 = vcmask 916480  }
  0x2f   : > { %vm350_vm5 = vcmp.lt.s32.totalorder %v346_v62, 16 }
  0x31   : > { %397 = vperm.xlu1 %1866, %v1712_v10   ;;  %386 = vperm.xlu0 %1865, %v383_v11  }
  0x35   : > { %408 = vperm.xlu1 %1866, %v1713_v12   ;;  %419 = vperm.xlu0 %1865, %v1714_v13  }
  0x39   : > { %426 = vrot.lane.b32.xlu1 %v2062_v5, %s1952_s28  ;;  %428 = vrot.lane.b32.xlu0 %v2077_v8, %s1952_s28 }
  0x3d   : > { %430 = vrot.lane.b32.xlu1 %v2064_v6, %s1952_s28  ;;  %432 = vrot.lane.b32.xlu0 %v2073_v7, %s1952_s28 }
  0x41   : > { %446 = vperm.xlu1 %1866, %v1715_v14   ;;  %457 = vperm.xlu0 %1865, %v1716_v15   ;;  %v1746_v15 = vld [vmem:[%s2055_s10 + $0x8c] sm:$0xf] }
  0x45   : > { %468 = vperm.xlu1 %1866, %v1717_v16   ;;  %479 = vperm.xlu0 %1865, %v1718_v17   ;;  %v1745_v16 = vld [vmem:[%s2055_s10 + $0x44] sm:$0xf] }
  0x49   : > { %510 = vperm.xlu1 %1866, %v1719_v18   ;;  %521 = vperm.xlu0 %1865, %v1720_v19  }
  0x4d   : > { %532 = vperm.xlu1 %1866, %v1721_v20   ;;  %543 = vperm.xlu0 %1865, %v1722_v21  }
  0x51   : > { %554 = vperm.xlu1 %1866, %v1723_v22   ;;  %565 = vperm.xlu0 %1865, %v1724_v23   ;;  %v1747_v23 = vld [vmem:[%s2060_s19 + $0x4] sm:$0xf] }
  0x55   : > { %576 = vperm.xlu1 %1866, %v1725_v24   ;;  %587 = vperm.xlu0 %1865, %v1726_v25   ;;  %v899_v24 = vld [vmem:[%s2060_s19] sm:$0xf] }
  0x59   : > { %598 = vperm.xlu1 %1866, %v1727_v26   ;;  %618 = vperm.xlu0 %1865, %v1728_v27  }
  0x5d   : > { %638 = vperm.xlu1 %1866, %v1729_v28   ;;  %658 = vperm.xlu0 %1865, %v1730_v29  }
  0x61   : > { %678 = vperm.xlu1 %1866, %v1731_v30   ;;  %689 = vperm.xlu0 %1865, %v1732_v31  }
  0x65   : > { %700 = vperm.xlu1 %1866, %v1733_v32   ;;  %711 = vperm.xlu0 %1865, %v1734_v33  }
  0x69   : > { %739 = vperm.xlu1 %1866, %v1735_v34   ;;  %750 = vperm.xlu0 %1865, %v1736_v35  }
  0x6d   : > { %761 = vperm.xlu1 %1866, %v1737_v36   ;;  %772 = vperm.xlu0 %1865, %v1738_v37  }
  0x71   : > { %799 = vperm.xlu1 %1866, %v1739_v38   ;;  %810 = vperm.xlu0 %1865, %v1740_v39  }
  0x75   : > { %821 = vperm.xlu1 %1866, %v1741_v40   ;;  %832 = vperm.xlu0 %1865, %v1742_v41  }
  0x79   : > { %859 = vperm.xlu1 %1866, %v1743_v42   ;;  %870 = vperm.xlu0 %1865, %v1744_v43  }
  0x93   : > { %v301_v45 = vpop.permute.xlu1 %300  ;;  %v297_v46 = vpop.permute.xlu0 %296 }
  0x94   : > { %v311_v47 = vsel %vm304_vm0, 0.0, %v297_v46  ;;  %v312_v49 = vsel %vm304_vm0, 0.0, %v301_v45 }
  0x95   : > { %v2129_v48 = vsel %vm315_vm1, %v311_v47, 0.0  ;;  %v2138_v54 = vsel %vm315_vm1, %v312_v49, 0.0 }
  0x96   : > { %718 = vrot.lane.b32.xlu1 %v2129_v48, %s1953_s29  ;;  %366 = vrot.lane.b32.xlu0 %v2129_v48, %s1952_s28 }
  0x97   : > { %v303_v52 = vpop.permute.xlu1 %302  ;;  %v299_v53 = vpop.permute.xlu0 %298 }
  0x98   : > { %v305_v55 = vsel %vm304_vm0, %v297_v46, %v299_v53  ;;  %v306_v61 = vsel %vm304_vm0, %v301_v45, %v303_v52 }
  0x99   : > { %v2147_v58 = vsel %vm316_vm3, %v305_v55, 0.0  ;;  %v2159_v2 = vsel %vm316_vm3, %v306_v61, 0.0 }
  0x9a   : > { %722 = vrot.lane.b32.xlu1 %v2138_v54, %s1953_s29  ;;  %370 = vrot.lane.b32.xlu0 %v2138_v54, %s1952_s28 }
  0x9b   : > { %v332_v56 = vpop.permute.xlu1 %331  ;;  %v330_v60 = vpop.permute.xlu0 %329 }
  0x9c   : > { %v344_v57 = vsel %vm337_vm2, %v332_v56, 0.0  ;;  %v338_v10 = vsel %vm337_vm2, %v330_v60, %v332_v56 }
  0x9d   : > { %v2149_v59 = vsel %vm351_vm4, %v344_v57, 0.0  ;;  %v2168_v12 = vsel %vm350_vm5, %v338_v10, 0.0 }
  0x9e   : > { %492 = vrot.lane.b32.xlu0 %v2149_v59, %s1952_s28  ;;  %368 = vrot.lane.b32.xlu1 %v2147_v58, %s1952_s28 }
  0x9f   : > { %v336_v63 = vpop.permute.xlu1 %335  ;;  %v334_v11 = vpop.permute.xlu0 %333 }
  0xa0   : > { %v345_v1 = vsel %vm337_vm2, %v336_v63, 0.0  ;;  %v339_v13 = vsel %vm337_vm2, %v334_v11, %v336_v63 }
  0xa1   : > { %v2161_v9 = vsel %vm351_vm4, %v345_v1, 0.0  ;;  %v2175_v14 = vsel %vm350_vm5, %v339_v13, 0.0 }
  0xa2   : > { %496 = vrot.lane.b32.xlu0 %v2161_v9, %s1952_s28  ;;  %372 = vrot.lane.b32.xlu1 %v2159_v2, %s1952_s28 }
  0xa6   : > { %720 = vrot.lane.b32.xlu0 %v2147_v58, %s1953_s29  ;;  %490 = vrot.lane.b32.xlu1 %v2168_v12, %s1952_s28 }
  0xaa   : > { %724 = vrot.lane.b32.xlu0 %v2159_v2, %s1953_s29  ;;  %494 = vrot.lane.b32.xlu1 %v2175_v14, %s1952_s28 }
  0xae   : > { %781 = vrot.lane.b32.xlu0 %v2077_v8, %s1953_s29  ;;  %779 = vrot.lane.b32.xlu1 %v2062_v5, %s1953_s29 }
  0xb0   : > { %v2187_v17 = vpop.permute.xlu1 %397  ;;  %v2189_v18 = vpop.permute.xlu0 %386 }
  0xb2   : > { %892 = vperm.xlu0 %1865, %v1746_v15   ;;  %881 = vperm.xlu1 %1866, %v1745_v16  }
  0xb4   : > { %v2191_v19 = vpop.permute.xlu1 %408  ;;  %v2193_v20 = vpop.permute.xlu0 %419 }
  0xb6   : > { %785 = vrot.lane.b32.xlu0 %v2073_v7, %s1953_s29  ;;  %783 = vrot.lane.b32.xlu1 %v2064_v6, %s1953_s29 }
  0xb8   : > { %v427_v8 = vpop.permute.xlu1 %426  ;;  %v429_v21 = vpop.permute.xlu0 %428 }
  0xb9   : > { %v434_v22 = vsel %vm374_vm6, %v427_v8, %v429_v21  ;;  %v440_v27 = vsel %vm374_vm6, 0.0, %v427_v8 }
  0xba   : > { %841 = vrot.lane.b32.xlu0 %v2149_v59, %s1953_s29  ;;  %839 = vrot.lane.b32.xlu1 %v2168_v12, %s1953_s29 }
  0xbc   : > { %v431_v25 = vpop.permute.xlu1 %430  ;;  %v433_v26 = vpop.permute.xlu0 %432 }
  0xbd   : > { %v435_v7 = vsel %vm374_vm6, %v431_v25, %v433_v26  ;;  %v441_v34 = vsel %vm374_vm6, 0.0, %v431_v25 }
  0xbe   : > { %916 = vperm.xlu0 %1865, %v1747_v23   ;;  %902 = vperm.xlu1 %1866, %v899_v24  }
  0xc0   : > { %v447_v28 = vpop.permute.xlu1 %446  ;;  %v458_v29 = vpop.permute.xlu0 %457 }
  0xc1   : > { %v449_v30 = vmul.f32 %v447_v28, %v440_v27  ;;  %v2208_v31 = vmul.f32 %v447_v28, %v434_v22  ;;  %v460_v32 = vmul.f32 %v458_v29, %v440_v27  ;;  %v2210_v33 = vmul.f32 %v458_v29, %v434_v22 }
  0xc2   : > { %845 = vrot.lane.b32.xlu0 %v2161_v9, %s1953_s29  ;;  %843 = vrot.lane.b32.xlu1 %v2175_v14, %s1953_s29 }
  0xc4   : > { %v469_v35 = vpop.permute.xlu1 %468  ;;  %v480_v36 = vpop.permute.xlu0 %479 }
  0xc5   : > { %v471_v37 = vmul.f32 %v469_v35, %v441_v34  ;;  %v2217_v38 = vmul.f32 %v469_v35, %v435_v7  ;;  %v482_v39 = vmul.f32 %v480_v36, %v441_v34  ;;  %v2219_v40 = vmul.f32 %v480_v36, %v435_v7 }
  0xc8   : > { %v2221_v41 = vpop.permute.xlu1 %510  ;;  %v2223_v42 = vpop.permute.xlu0 %521 }
  0xcc   : > { %v2225_v43 = vpop.permute.xlu1 %532  ;;  %v2227_v44 = vpop.permute.xlu0 %543 }
  0xd0   : > { %v555_v45 = vpop.permute.xlu1 %554  ;;  %v566_v46 = vpop.permute.xlu0 %565 }
  0xd1   : > { %v2230_v47 = vmul.f32 %v555_v45, %v2129_v48  ;;  %v2233_v49 = vmul.f32 %v555_v45, %v2147_v58  ;;  %v2236_v50 = vmul.f32 %v566_v46, %v2129_v48  ;;  %v2239_v51 = vmul.f32 %v566_v46, %v2147_v58 }
  0xd2   : > { %v1954_v46 = vmov 839922192  }
  0xd4   : > { %v577_v52 = vpop.permute.xlu1 %576  ;;  %v588_v53 = vpop.permute.xlu0 %587 }
  0xd5   : > { %v2242_v55 = vmul.f32 %v577_v52, %v2138_v54  ;;  %v2245_v56 = vmul.f32 %v577_v52, %v2159_v2  ;;  %v2248_v57 = vmul.f32 %v588_v53, %v2138_v54  ;;  %v2251_v60 = vmul.f32 %v588_v53, %v2159_v2 }
  0xd6   : > { %v601_v52 = vunpack.c.l.s4 %v1954_v46 }
  0xd8   : > { %v2253_v61 = vpop.permute.xlu1 %598  ;;  %v2255_v48 = vpop.permute.xlu0 %618 }
  0xdc   : > { %v2257_v58 = vpop.permute.xlu1 %638  ;;  %v2259_v62 = vpop.permute.xlu0 %658 }
  0xe0   : > { %v2261_v63 = vpop.permute.xlu1 %678  ;;  %v2263_v1 = vpop.permute.xlu0 %689 }
  0xe4   : > { %v2265_v10 = vpop.permute.xlu1 %700  ;;  %v2267_v11 = vpop.permute.xlu0 %711 }
  0xe8   : > { %v2269_v54 = vpop.permute.xlu1 %739  ;;  %v2271_v2 = vpop.permute.xlu0 %750 }
  0xec   : > { %v2273_v13 = vpop.permute.xlu1 %761  ;;  %v2275_v15 = vpop.permute.xlu0 %772 }
  0xed   : > { %2806 = vst [vmem:[#allocation7_spill] sm:$0xff] %v2273_v13  ;;  %2807 = vst [vmem:[#allocation8_spill] sm:$0xff] %v2275_v15 }
  0xf0   : > { %v2277_v16 = vpop.permute.xlu1 %799  ;;  %v2279_v8 = vpop.permute.xlu0 %810 }
  0xf1   : > { %2808 = vst [vmem:[#allocation9_spill] sm:$0xff] %v2277_v16  ;;  %2809 = vst [vmem:[#allocation10_spill] sm:$0xff] %v2279_v8 }
  0xf4   : > { %v2281_v21 = vpop.permute.xlu1 %821  ;;  %v2283_v22 = vpop.permute.xlu0 %832 }
  0xf5   : > { %2810 = vst [vmem:[#allocation11_spill] sm:$0xff] %v2281_v21  ;;  %2811 = vst [vmem:[#allocation12_spill] sm:$0xff] %v2283_v22  ;;  %v2815_v22 = vlaneseq }
  0xf7   : > { %v604_v8 = vshrl.u32 %v2815_v22, 7 }
  0xf8   : > { %v2285_v23 = vpop.permute.xlu1 %859  ;;  %v2287_v24 = vpop.permute.xlu0 %870 }
  0xf9   : > { %2812 = vst [vmem:[#allocation13_spill] sm:$0xff] %v2285_v23  ;;  %2813 = vst [vmem:[#allocation14_spill] sm:$0xff] %v2287_v24  ;;  %v602_v23 = vunpack.c.0.s8 %v601_v52 }
 0x108   : > { %v2289_v25 = vpop.permute.xlu1 %718  ;;  %v367_v26 = vpop.permute.xlu0 %366 }
 0x109   : > { %v381_v7 = vsel %vm374_vm6, 0.0, %v367_v26 }
 0x10a   : > { %v389_v34 = vmul.f32 %v2189_v18, %v381_v7  ;;  %v400_v35 = vmul.f32 %v2187_v17, %v381_v7 }
 0x10c   : > { %v2292_v27 = vpop.permute.xlu1 %722  ;;  %v371_v28 = vpop.permute.xlu0 %370 }
 0x10d   : > { %2814 = vst [vmem:[#allocation15_spill] sm:$0xff] %v2292_v27  ;;  %v382_v29 = vsel %vm374_vm6, 0.0, %v371_v28 }
 0x10e   : > { %v411_v36 = vmul.f32 %v2191_v19, %v382_v29  ;;  %v422_v45 = vmul.f32 %v2193_v20, %v382_v29 }
 0x110   : > { %v413_v53 = vadd.f32 %v411_v36, %v389_v34  ;;  %v424_v0 = vadd.f32 %v422_v45, %v400_v35  ;;  %v369_v4 = vpop.permute.xlu1 %368  ;;  %v493_v7 = vpop.permute.xlu0 %492 }
 0x111   : > { %v375_v21 = vsel %vm374_vm6, %v367_v26, %v369_v4 }
 0x112   : > { %v451_v3 = vadd.f32 %v449_v30, %v413_v53  ;;  %v462_v24 = vadd.f32 %v460_v32, %v424_v0  ;;  %v390_v29 = vmul.f32 %v2189_v18, %v375_v21  ;;  %v401_v46 = vmul.f32 %v2187_v17, %v375_v21 }
 0x113   : > { %v605_v0 = vsub.s32 %v602_v23, %v604_v8 }
 0x114   : > { %v373_v16 = vpop.permute.xlu1 %372  ;;  %v473_v15 = vadd.f32 %v471_v37, %v451_v3  ;;  %v484_v13 = vadd.f32 %v482_v39, %v462_v24 }
 0x115   : > { %v376_v27 = vsel %vm374_vm6, %v371_v28, %v373_v16  ;;  %v606_v17 = vrot.slane %v2253_v61, %v605_v0  ;;  %v497_v16 = vpop.permute.xlu0 %496 }
 0x116   : > { %v412_v34 = vmul.f32 %v2191_v19, %v376_v27  ;;  %v423_v30 = vmul.f32 %v2193_v20, %v376_v27 }
 0x118   : > { %v414_v32 = vadd.f32 %v412_v34, %v390_v29  ;;  %v425_v35 = vadd.f32 %v423_v30, %v401_v46  ;;  %v491_v22 = vpop.permute.xlu1 %490 }
 0x119   : > { %v498_v4 = vsel %vm374_vm6, %v491_v22, %v493_v7  ;;  %v504_v3 = vsel %vm374_vm6, 0.0, %v491_v22  ;;  %v721_v29 = vpop.permute.xlu0 %720 }
 0x11a   : > { %v452_v37 = vadd.f32 %v2208_v31, %v414_v32  ;;  %v463_v39 = vadd.f32 %v2210_v33, %v425_v35  ;;  %v513_v18 = vmul.f32 %v2221_v41, %v504_v3  ;;  %v524_v19 = vmul.f32 %v2223_v42, %v504_v3 }
 0x11b   : > { %v514_v21 = vmul.f32 %v2221_v41, %v498_v4  ;;  %v525_v23 = vmul.f32 %v2223_v42, %v498_v4  ;;  %v626_v31 = vrot.slane %v2255_v48, %v605_v0  ;;  %v608_v48 = vmul.f32 %v606_v17, %v2062_v5 }
 0x11c   : > { %v474_v20 = vadd.f32 %v2217_v38, %v452_v37  ;;  %v485_v8 = vadd.f32 %v2219_v40, %v463_v39  ;;  %v495_v24 = vpop.permute.xlu1 %494  ;;  %v515_v26 = vadd.f32 %v513_v18, %v473_v15  ;;  %v646_v40 = vrot.slane %v2257_v58, %v605_v0 }
 0x11d   : > { %v499_v33 = vsel %vm374_vm6, %v495_v24, %v497_v16  ;;  %v505_v27 = vsel %vm374_vm6, 0.0, %v495_v24  ;;  %v526_v45 = vadd.f32 %v524_v19, %v484_v13  ;;  %v666_v15 = vrot.slane %v2259_v62, %v605_v0 }
 0x11e   : > { %v516_v61 = vadd.f32 %v514_v21, %v474_v20  ;;  %v527_v28 = vadd.f32 %v525_v23, %v485_v8  ;;  %v535_v36 = vmul.f32 %v2225_v43, %v505_v27  ;;  %v536_v38 = vmul.f32 %v2225_v43, %v499_v33 }
 0x11f   : > { %v546_v41 = vmul.f32 %v2227_v44, %v505_v27  ;;  %v547_v42 = vmul.f32 %v2227_v44, %v499_v33  ;;  %v628_v7 = vmul.f32 %v626_v31, %v2062_v5  ;;  %v648_v13 = vmul.f32 %v646_v40, %v2064_v6 }
 0x120   : > { %v537_v52 = vadd.f32 %v535_v36, %v515_v26  ;;  %v538_v53 = vadd.f32 %v536_v38, %v516_v61  ;;  %v610_v32 = vcombine.high %v608_v48, %v608_v48  ;;  %v668_v62 = vmul.f32 %v666_v15, %v2064_v6  ;;  %v780_v33 = vpop.permute.xlu1 %779 }
 0x121   : > { %v548_v46 = vadd.f32 %v546_v41, %v526_v45  ;;  %v549_v34 = vadd.f32 %v547_v42, %v527_v28  ;;  %v630_v22 = vcombine.high %v628_v7, %v628_v7  ;;  %v650_v37 = vcombine.high %v648_v13, %v648_v13 }
 0x122   : > { %v559_v43 = vadd.f32 %v2230_v47, %v537_v52  ;;  %v560_v58 = vadd.f32 %v2233_v49, %v538_v53  ;;  %v670_v17 = vcombine.high %v668_v62, %v668_v62  ;;  %v682_v8 = vmul.f32 %v2261_v63, %v2149_v59 }
 0x123   : > { %v570_v30 = vadd.f32 %v2236_v50, %v548_v46  ;;  %v571_v44 = vadd.f32 %v2239_v51, %v549_v34  ;;  %v725_v50 = vpop.permute.xlu0 %724  ;;  %v681_v51 = vmul.f32 %v2261_v63, %v2168_v12  ;;  %v714_v21 = vmul.f32 %v2267_v11, %v2175_v14  ;;  %v2817_v46 = vld [vmem:[#allocation7_spill] sm:$0xff] }
 0x124   : > { %v581_v0 = vadd.f32 %v2242_v55, %v559_v43  ;;  %v582_v35 = vadd.f32 %v2245_v56, %v560_v58  ;;  %v692_v55 = vmul.f32 %v2263_v1, %v2168_v12  ;;  %v693_v24 = vmul.f32 %v2263_v1, %v2149_v59 }
 0x125   : > { %v592_v4 = vadd.f32 %v2248_v57, %v570_v30  ;;  %v593_v47 = vadd.f32 %v2251_v60, %v571_v44  ;;  %v703_v57 = vmul.f32 %v2265_v10, %v2175_v14  ;;  %v704_v28 = vmul.f32 %v2265_v10, %v2161_v9 }
 0x126   : > { %v612_v3 = vadd.f32 %v608_v48, %v581_v0  ;;  %v613_v49 = vadd.f32 %v610_v32, %v582_v35  ;;  %v715_v63 = vmul.f32 %v2267_v11, %v2161_v9  ;;  %v727_v14 = vsel %vm726_vm7, %v2289_v25, %v721_v29  ;;  %v2816_v48 = vld [vmem:[#allocation15_spill] sm:$0xff] }
 0x127   : > { %v632_v39 = vadd.f32 %v628_v7, %v592_v4  ;;  %v633_v18 = vadd.f32 %v630_v22, %v593_v47  ;;  %v782_v27 = vpop.permute.xlu0 %781  ;;  %v733_v36 = vsel %vm726_vm7, %v721_v29, 0.0  ;;  %v742_v45 = vmul.f32 %v2269_v54, %v727_v14 }
 0x128   : > { %v652_v16 = vadd.f32 %v648_v13, %v612_v3  ;;  %v653_v56 = vadd.f32 %v650_v37, %v613_v49  ;;  %v743_v41 = vmul.f32 %v2269_v54, %v733_v36  ;;  %v753_v42 = vmul.f32 %v2271_v2, %v727_v14  ;;  %v2818_v54 = vld [vmem:[#allocation8_spill] sm:$0xff]  ;;  %v2819_v37 = vld [vmem:[#allocation9_spill] sm:$0xff] }
 0x129   : > { %v672_v19 = vadd.f32 %v668_v62, %v632_v39  ;;  %v673_v60 = vadd.f32 %v670_v17, %v633_v18  ;;  %v754_v10 = vmul.f32 %v2271_v2, %v733_v36  ;;  %v728_v9 = vsel %vm726_vm7, %v2816_v48, %v725_v50 }
 0x12a   : > { %v683_v20 = vadd.f32 %v681_v51, %v652_v16  ;;  %v684_v12 = vadd.f32 %v682_v8, %v653_v56  ;;  %v734_v11 = vsel %vm726_vm7, %v725_v50, 0.0  ;;  %v764_v34 = vmul.f32 %v2817_v46, %v728_v9  ;;  %v2820_v50 = vld [vmem:[#allocation11_spill] sm:$0xff]  ;;  %v2821_v16 = vld [vmem:[#allocation10_spill] sm:$0xff] }
 0x12b   : > { %v694_v23 = vadd.f32 %v692_v55, %v672_v19  ;;  %v695_v61 = vadd.f32 %v693_v24, %v673_v60  ;;  %v765_v43 = vmul.f32 %v2817_v46, %v734_v11  ;;  %v775_v58 = vmul.f32 %v2818_v54, %v728_v9  ;;  %v2822_v19 = vld [vmem:[#allocation12_spill] sm:$0xff] }
 0x12c   : > { %v705_v31 = vadd.f32 %v703_v57, %v683_v20  ;;  %v706_v38 = vadd.f32 %v704_v28, %v684_v12  ;;  %v776_v13 = vmul.f32 %v2818_v54, %v734_v11  ;;  %v787_v2 = vsel %vm726_vm7, %v780_v33, %v782_v27 }
 0x12d   : > { %v716_v26 = vadd.f32 %v714_v21, %v694_v23  ;;  %v717_v40 = vadd.f32 %v715_v63, %v695_v61  ;;  %v793_v30 = vsel %vm726_vm7, %v782_v27, 0.0  ;;  %v802_v39 = vmul.f32 %v2819_v37, %v787_v2  ;;  %v2823_v21 = vld [vmem:[#allocation13_spill] sm:$0xff]  ;;  %v2824_v27 = vld [vmem:[#allocation14_spill] sm:$0xff] }
 0x12e   : > { %v744_v25 = vadd.f32 %v742_v45, %v705_v31  ;;  %v745_v15 = vadd.f32 %v743_v41, %v706_v38  ;;  %v803_v18 = vmul.f32 %v2819_v37, %v793_v30  ;;  %v813_v55 = vmul.f32 %v2821_v16, %v787_v2 }
 0x12f   : > { %v755_v7 = vadd.f32 %v753_v42, %v716_v26  ;;  %v756_v29 = vadd.f32 %v754_v10, %v717_v40  ;;  %v814_v56 = vmul.f32 %v2821_v16, %v793_v30 }
 0x130   : > { %v766_v62 = vadd.f32 %v764_v34, %v744_v25  ;;  %v767_v0 = vadd.f32 %v765_v43, %v745_v15 }
 0x131   : > { %v882_v59 = vpop.permute.xlu1 %881  ;;  %v2357_v1 = vpop.permute.xlu0 %892  ;;  %v777_v4 = vadd.f32 %v775_v58, %v755_v7  ;;  %v778_v47 = vadd.f32 %v776_v13, %v756_v29 }
 0x132   : > { %v804_v20 = vadd.f32 %v802_v39, %v766_v62  ;;  %v805_v8 = vadd.f32 %v803_v18, %v767_v0 }
 0x133   : > { %v815_v26 = vadd.f32 %v813_v55, %v777_v4  ;;  %v816_v33 = vadd.f32 %v814_v56, %v778_v47 }
 0x135   : > { %v784_v52 = vpop.permute.xlu1 %783  ;;  %v786_v53 = vpop.permute.xlu0 %785 }
 0x136   : > { %v788_v44 = vsel %vm726_vm7, %v784_v52, %v786_v53  ;;  %v794_v32 = vsel %vm726_vm7, %v786_v53, 0.0 }
 0x137   : > { %v824_v17 = vmul.f32 %v2820_v50, %v788_v44  ;;  %v825_v51 = vmul.f32 %v2820_v50, %v794_v32  ;;  %v835_v57 = vmul.f32 %v2822_v19, %v788_v44  ;;  %v836_v60 = vmul.f32 %v2822_v19, %v794_v32 }
 0x139   : > { %v840_v35 = vpop.permute.xlu1 %839  ;;  %v842_v22 = vpop.permute.xlu0 %841  ;;  %v826_v63 = vadd.f32 %v824_v17, %v804_v20  ;;  %v827_v14 = vadd.f32 %v825_v51, %v805_v8  ;;  %v837_v36 = vadd.f32 %v835_v57, %v815_v26  ;;  %v838_v38 = vadd.f32 %v836_v60, %v816_v33 }
 0x13a   : > { %v847_v3 = vsel %vm726_vm7, %v840_v35, %v842_v22  ;;  %v853_v49 = vsel %vm726_vm7, %v842_v22, 0.0 }
 0x13b   : > { %v862_v23 = vmul.f32 %v2823_v21, %v847_v3  ;;  %v863_v24 = vmul.f32 %v2823_v21, %v853_v49  ;;  %v873_v61 = vmul.f32 %v2824_v27, %v847_v3  ;;  %v874_v28 = vmul.f32 %v2824_v27, %v853_v49 }
 0x13d   : > { %v903_v31 = vpop.permute.xlu1 %902  ;;  %v917_v12 = vpop.permute.xlu0 %916  ;;  %v864_v40 = vadd.f32 %v862_v23, %v826_v63  ;;  %v865_v45 = vadd.f32 %v863_v24, %v827_v14  ;;  %v875_v10 = vadd.f32 %v873_v61, %v837_v36  ;;  %v876_v48 = vadd.f32 %v874_v28, %v838_v38 }
 0x141   : > { %v844_v41 = vpop.permute.xlu1 %843  ;;  %v846_v42 = vpop.permute.xlu0 %845 }
 0x142   : > { %v848_v9 = vsel %vm726_vm7, %v844_v41, %v846_v42  ;;  %v854_v11 = vsel %vm726_vm7, %v846_v42, 0.0 }
 0x143   : > { %v884_v25 = vmul.f32 %v882_v59, %v848_v9  ;;  %v885_v15 = vmul.f32 %v882_v59, %v854_v11  ;;  %v895_v52 = vmul.f32 %v2357_v1, %v848_v9  ;;  %v896_v53 = vmul.f32 %v2357_v1, %v854_v11 }
 0x145   : > { %v886_v7 = vadd.f32 %v884_v25, %v864_v40  ;;  %v887_v29 = vadd.f32 %v885_v15, %v865_v45  ;;  %v897_v46 = vadd.f32 %v895_v52, %v875_v10  ;;  %v898_v34 = vadd.f32 %v896_v53, %v876_v48 }
 0x147   : > { %v905_v43 = vadd.f32 %v903_v31, %v886_v7  ;;  %v906_v54 = vadd.f32 %v903_v31, %v887_v29  ;;  %v919_v58 = vadd.f32 %v917_v12, %v897_v46  ;;  %v920_v13 = vadd.f32 %v917_v12, %v898_v34 }
 0x149   : > { %v909_v2 = vcombine.low %v905_v43, %v906_v54  ;;  %v923_v30 = vcombine.low %v919_v58, %v920_v13 }
 0x14b   : > { %911 = vst [vmem:[%s2066_s21] sm:$0xff] %v909_v2  ;;  %1748 = vst [vmem:[%s2066_s21 + $0x8] sm:$0xff] %v923_v30 }
 0x14c PF: > { %p1749_p13 = scmp.ne.s32.totalorder %s1939_s15, 1 }
 0x14e   : > { %930 = sbr.rel (%p1749_p13) target bundleno = 641 (0x281), region = 40 }
 0x155   : > { %s1955_s30 = smov 2   ;;  %v2399_v59 = vcombine.high %v2064_v6, %v2064_v6  ;;  %v2403_v1 = vcombine.high %v2062_v5, %v2062_v5  ;;  %v1956_v44 = vmov 0   ;;  %s1957_s4 = smov 126   ;;  %v1750_v32 = vld [vmem:[%s2055_s10 + $0x48] sm:$0xf]  ;;  %v2825_v14 = vld [vmem:[#allocation5_spill] sm:$0xff] }
 0x156   : > { %939 = vrot.lane.b32.xlu1 %v2064_v6, %s1955_s30  ;;  %935 = vrot.lane.b32.xlu0 %v2062_v5, %s1955_s30  ;;  %v1022_v62 = vld [vmem:[%s2055_s10] sm:$0xf]  ;;  %v1751_v0 = vld [vmem:[%s2055_s10 + $0x24] sm:$0xf]  ;;  %s1958_s5 = smov 32   ;;  %v952_v36 = vadd.s32 4294967294, %v2825_v14 }
 0x157   : > { %1868 = vset.pattern.permute.xlu1 %v1956_v44  ;;  %1867 = vset.pattern.permute.xlu0 %v1956_v44  ;;  %v1752_v35 = vld [vmem:[%s2055_s10 + $0x6c] sm:$0xf]  ;;  %v1753_v22 = vld [vmem:[%s2055_s10 + $0x4] sm:$0xf]  ;;  %v1755_v47 = vld [vmem:[%s2055_s10 + $0x28] sm:$0xf] }
 0x158   : > { %v1754_v4 = vld [vmem:[%s2055_s10 + $0x4c] sm:$0xf]  ;;  %v1756_v3 = vld [vmem:[%s2055_s10 + $0x70] sm:$0xf]  ;;  %v1757_v49 = vld [vmem:[%s2055_s10 + $0x8] sm:$0xf] }
 0x159   : > { %v1758_v37 = vld [vmem:[%s2055_s10 + $0x50] sm:$0xf]  ;;  %v1759_v39 = vld [vmem:[%s2055_s10 + $0x2c] sm:$0xf]  ;;  %v1760_v18 = vld [vmem:[%s2055_s10 + $0x74] sm:$0xf] }
 0x15a   : > { %941 = vrot.lane.b32.xlu1 %v2399_v59, %s1955_s30  ;;  %937 = vrot.lane.b32.xlu0 %v2403_v1, %s1955_s30  ;;  %v1761_v50 = vld [vmem:[%s2055_s10 + $0xc] sm:$0xf]  ;;  %v1762_v17 = vld [vmem:[%s2055_s10 + $0x54] sm:$0xf]  ;;  %vm943_vm8 = vcmask 15360   ;;  %vm954_vm9 = vcmp.ge.s32.totalorder %v952_v36, 0 }
 0x15b   : > { %v1763_v51 = vld [vmem:[%s2055_s10 + $0x30] sm:$0xf]  ;;  %v1764_v16 = vld [vmem:[%s2055_s10 + $0x78] sm:$0xf]  ;;  %v1767_v19 = vld [vmem:[%s2055_s10 + $0x34] sm:$0xf] }
 0x15c   : > { %v1765_v55 = vld [vmem:[%s2055_s10 + $0x10] sm:$0xf]  ;;  %v1766_v56 = vld [vmem:[%s2055_s10 + $0x58] sm:$0xf]  ;;  %v1768_v57 = vld [vmem:[%s2055_s10 + $0x7c] sm:$0xf] }
 0x15d   : > { %v1769_v60 = vld [vmem:[%s2055_s10 + $0x14] sm:$0xf]  ;;  %v1770_v20 = vld [vmem:[%s2055_s10 + $0x5c] sm:$0xf]  ;;  %v1771_v8 = vld [vmem:[%s2055_s10 + $0x38] sm:$0xf] }
 0x15e   : > { %970 = vrot.lane.b32.xlu1 %v2403_v1, %s1957_s4  ;;  %968 = vrot.lane.b32.xlu0 %v2062_v5, %s1957_s4  ;;  %v1772_v21 = vld [vmem:[%s2055_s10 + $0x80] sm:$0xf]  ;;  %v1773_v23 = vld [vmem:[%s2055_s10 + $0x18] sm:$0xf]  ;;  %s1959_s6 = smov 96   ;;  %v2826_v10 = vld [vmem:[#allocation6_spill] sm:$0xff] }
 0x15f   : > { %v1774_v24 = vld [vmem:[%s2055_s10 + $0x60] sm:$0xf]  ;;  %v1775_v31 = vld [vmem:[%s2055_s10 + $0x3c] sm:$0xf]  ;;  %v1776_v12 = vld [vmem:[%s2055_s10 + $0x84] sm:$0xf] }
 0x160   : > { %v1777_v26 = vld [vmem:[%s2055_s10 + $0x1c] sm:$0xf]  ;;  %v1778_v33 = vld [vmem:[%s2055_s10 + $0x64] sm:$0xf]  ;;  %v1779_v27 = vld [vmem:[%s2055_s10 + $0x40] sm:$0xf] }
 0x161   : > { %v1780_v61 = vld [vmem:[%s2055_s10 + $0x88] sm:$0xf]  ;;  %v1781_v28 = vld [vmem:[%s2055_s10 + $0x20] sm:$0xf]  ;;  %v953_v48 = vadd.s32 4294967294, %v2826_v10  ;;  %v986_v9 = vadd.s32 2, %v2826_v10 }
 0x162   : > { %974 = vrot.lane.b32.xlu1 %v2399_v59, %s1957_s4  ;;  %972 = vrot.lane.b32.xlu0 %v2064_v6, %s1957_s4  ;;  %v1782_v63 = vld [vmem:[%s2055_s10 + $0x68] sm:$0xf]  ;;  %vm976_vm10 = vcmask 1031168   ;;  %v985_v54 = vadd.s32 2, %v2825_v14  ;;  %vm1013_vm14 = vcmask 261120   ;;  %vm1365_vm15 = vcmask 785408  }
 0x163   : > { %vm955_vm11 = vcmp.ge.s32.totalorder %v953_v48, 0  ;;  %vm990_vm12 = vcmp.lt.s32.totalorder %v986_v9, 16 }
 0x164   : > { %vm989_vm13 = vcmp.lt.s32.totalorder %v985_v54, 16 }
 0x166   : > { %1036 = vperm.xlu1 %1868, %v1750_v32   ;;  %1025 = vperm.xlu0 %1867, %v1022_v62  }
 0x16a   : > { %1047 = vperm.xlu1 %1868, %v1751_v0   ;;  %1058 = vperm.xlu0 %1867, %v1752_v35  }
 0x16e   : > { %1065 = vrot.lane.b32.xlu1 %v2062_v5, %s1958_s5  ;;  %1067 = vrot.lane.b32.xlu0 %v2403_v1, %s1958_s5 }
 0x172   : > { %1069 = vrot.lane.b32.xlu1 %v2064_v6, %s1958_s5  ;;  %1071 = vrot.lane.b32.xlu0 %v2399_v59, %s1958_s5 }
 0x176   : > { %1085 = vperm.xlu1 %1868, %v1753_v22   ;;  %1096 = vperm.xlu0 %1867, %v1754_v4   ;;  %v1784_v22 = vld [vmem:[%s2055_s10 + $0x8c] sm:$0xf]  ;;  %v1783_v4 = vld [vmem:[%s2055_s10 + $0x44] sm:$0xf] }
 0x17a   : > { %1107 = vperm.xlu1 %1868, %v1755_v47   ;;  %1118 = vperm.xlu0 %1867, %v1756_v3  }
 0x17e   : > { %1149 = vperm.xlu1 %1868, %v1757_v49   ;;  %1160 = vperm.xlu0 %1867, %v1758_v37  }
 0x182   : > { %1171 = vperm.xlu1 %1868, %v1759_v39   ;;  %1182 = vperm.xlu0 %1867, %v1760_v18  }
 0x186   : > { %1193 = vperm.xlu1 %1868, %v1761_v50   ;;  %1204 = vperm.xlu0 %1867, %v1762_v17   ;;  %v1785_v50 = vld [vmem:[%s2060_s19 + $0x4] sm:$0xf]  ;;  %v1538_v17 = vld [vmem:[%s2060_s19] sm:$0xf] }
 0x18a   : > { %1215 = vperm.xlu1 %1868, %v1763_v51   ;;  %1226 = vperm.xlu0 %1867, %v1764_v16  }
 0x18e   : > { %1237 = vperm.xlu1 %1868, %v1765_v55   ;;  %1257 = vperm.xlu0 %1867, %v1766_v56  }
 0x192   : > { %1277 = vperm.xlu1 %1868, %v1767_v19   ;;  %1297 = vperm.xlu0 %1867, %v1768_v57  }
 0x196   : > { %1317 = vperm.xlu1 %1868, %v1769_v60   ;;  %1328 = vperm.xlu0 %1867, %v1770_v20  }
 0x19a   : > { %1339 = vperm.xlu1 %1868, %v1771_v8   ;;  %1350 = vperm.xlu0 %1867, %v1772_v21  }
 0x19e   : > { %1378 = vperm.xlu1 %1868, %v1773_v23   ;;  %1389 = vperm.xlu0 %1867, %v1774_v24  }
 0x1a2   : > { %1400 = vperm.xlu1 %1868, %v1775_v31   ;;  %1411 = vperm.xlu0 %1867, %v1776_v12  }
 0x1a6   : > { %1438 = vperm.xlu1 %1868, %v1777_v26   ;;  %1449 = vperm.xlu0 %1867, %v1778_v33  }
 0x1aa   : > { %1460 = vperm.xlu1 %1868, %v1779_v27   ;;  %1471 = vperm.xlu0 %1867, %v1780_v61  }
 0x1ae   : > { %1498 = vperm.xlu1 %1868, %v1781_v28   ;;  %1509 = vperm.xlu0 %1867, %v1782_v63  }
 0x1c8   : > { %v940_v38 = vpop.permute.xlu1 %939  ;;  %v936_v40 = vpop.permute.xlu0 %935 }
 0x1c9   : > { %v950_v45 = vsel %vm943_vm8, 0.0, %v936_v40  ;;  %v951_v42 = vsel %vm943_vm8, 0.0, %v940_v38 }
 0x1ca   : > { %v2455_v41 = vsel %vm954_vm9, %v950_v45, 0.0  ;;  %v2464_v15 = vsel %vm954_vm9, %v951_v42, 0.0 }
 0x1cb   : > { %1357 = vrot.lane.b32.xlu1 %v2455_v41, %s1959_s6  ;;  %1005 = vrot.lane.b32.xlu0 %v2455_v41, %s1958_s5 }
 0x1cc   : > { %v942_v11 = vpop.permute.xlu1 %941  ;;  %v938_v25 = vpop.permute.xlu0 %937 }
 0x1cd   : > { %v944_v52 = vsel %vm943_vm8, %v936_v40, %v938_v25  ;;  %v945_v43 = vsel %vm943_vm8, %v940_v38, %v942_v11 }
 0x1ce   : > { %v2473_v29 = vsel %vm955_vm11, %v944_v52, 0.0  ;;  %v2485_v2 = vsel %vm955_vm11, %v945_v43, 0.0 }
 0x1cf   : > { %1361 = vrot.lane.b32.xlu1 %v2464_v15, %s1959_s6  ;;  %1009 = vrot.lane.b32.xlu0 %v2464_v15, %s1958_s5 }
 0x1d0   : > { %v971_v53 = vpop.permute.xlu1 %970  ;;  %v969_v34 = vpop.permute.xlu0 %968 }
 0x1d1   : > { %v983_v7 = vsel %vm976_vm10, %v971_v53, 0.0  ;;  %v977_v44 = vsel %vm976_vm10, %v969_v34, %v971_v53 }
 0x1d2   : > { %v2475_v46 = vsel %vm990_vm12, %v983_v7, 0.0  ;;  %v2494_v62 = vsel %vm989_vm13, %v977_v44, 0.0 }
 0x1d3   : > { %1131 = vrot.lane.b32.xlu0 %v2475_v46, %s1958_s5  ;;  %1007 = vrot.lane.b32.xlu1 %v2473_v29, %s1958_s5 }
 0x1d4   : > { %v975_v58 = vpop.permute.xlu1 %974  ;;  %v973_v32 = vpop.permute.xlu0 %972 }
 0x1d5   : > { %v984_v13 = vsel %vm976_vm10, %v975_v58, 0.0  ;;  %v978_v0 = vsel %vm976_vm10, %v973_v32, %v975_v58 }
 0x1d6   : > { %v2487_v30 = vsel %vm990_vm12, %v984_v13, 0.0  ;;  %v2501_v35 = vsel %vm989_vm13, %v978_v0, 0.0 }
 0x1d7   : > { %1135 = vrot.lane.b32.xlu0 %v2487_v30, %s1958_s5  ;;  %1011 = vrot.lane.b32.xlu1 %v2485_v2, %s1958_s5 }
 0x1db   : > { %1359 = vrot.lane.b32.xlu0 %v2473_v29, %s1959_s6  ;;  %1129 = vrot.lane.b32.xlu1 %v2494_v62, %s1958_s5 }
 0x1df   : > { %1363 = vrot.lane.b32.xlu0 %v2485_v2, %s1959_s6  ;;  %1133 = vrot.lane.b32.xlu1 %v2501_v35, %s1958_s5 }
 0x1e3   : > { %1420 = vrot.lane.b32.xlu0 %v2403_v1, %s1959_s6  ;;  %1418 = vrot.lane.b32.xlu1 %v2062_v5, %s1959_s6 }
 0x1e5   : > { %v2513_v47 = vpop.permute.xlu1 %1036  ;;  %v2515_v3 = vpop.permute.xlu0 %1025 }
 0x1e7   : > { %1531 = vperm.xlu0 %1867, %v1784_v22   ;;  %1520 = vperm.xlu1 %1868, %v1783_v4  }
 0x1e9   : > { %v2517_v49 = vpop.permute.xlu1 %1047  ;;  %v2519_v37 = vpop.permute.xlu0 %1058 }
 0x1eb   : > { %1424 = vrot.lane.b32.xlu0 %v2399_v59, %s1959_s6  ;;  %1422 = vrot.lane.b32.xlu1 %v2064_v6, %s1959_s6 }
 0x1ed   : > { %v1066_v1 = vpop.permute.xlu1 %1065  ;;  %v1068_v39 = vpop.permute.xlu0 %1067 }
 0x1ee   : > { %v1073_v18 = vsel %vm1013_vm14, %v1066_v1, %v1068_v39  ;;  %v1079_v55 = vsel %vm1013_vm14, 0.0, %v1066_v1 }
 0x1ef   : > { %1480 = vrot.lane.b32.xlu0 %v2475_v46, %s1959_s6  ;;  %1478 = vrot.lane.b32.xlu1 %v2494_v62, %s1959_s6 }
 0x1f1   : > { %v1070_v51 = vpop.permute.xlu1 %1069  ;;  %v1072_v16 = vpop.permute.xlu0 %1071 }
 0x1f2   : > { %v1074_v59 = vsel %vm1013_vm14, %v1070_v51, %v1072_v16  ;;  %v1080_v21 = vsel %vm1013_vm14, 0.0, %v1070_v51 }
 0x1f3   : > { %1555 = vperm.xlu0 %1867, %v1785_v50   ;;  %1541 = vperm.xlu1 %1868, %v1538_v17  }
 0x1f5   : > { %v1086_v56 = vpop.permute.xlu1 %1085  ;;  %v1097_v19 = vpop.permute.xlu0 %1096 }
 0x1f6   : > { %v1088_v57 = vmul.f32 %v1086_v56, %v1079_v55  ;;  %v2534_v60 = vmul.f32 %v1086_v56, %v1073_v18  ;;  %v1099_v20 = vmul.f32 %v1097_v19, %v1079_v55  ;;  %v2536_v8 = vmul.f32 %v1097_v19, %v1073_v18 }
 0x1f7   : > { %1484 = vrot.lane.b32.xlu0 %v2487_v30, %s1959_s6  ;;  %1482 = vrot.lane.b32.xlu1 %v2501_v35, %s1959_s6 }
 0x1f9   : > { %v1108_v23 = vpop.permute.xlu1 %1107  ;;  %v1119_v24 = vpop.permute.xlu0 %1118 }
 0x1fa   : > { %v1110_v31 = vmul.f32 %v1108_v23, %v1080_v21  ;;  %v2543_v12 = vmul.f32 %v1108_v23, %v1074_v59  ;;  %v1121_v26 = vmul.f32 %v1119_v24, %v1080_v21  ;;  %v2545_v33 = vmul.f32 %v1119_v24, %v1074_v59 }
 0x1fb   : > { %v1960_v23 = vmov 839922192  }
 0x1fc   : > { %v1240_v24 = vunpack.c.l.s4 %v1960_v23 }
 0x1fd   : > { %v2547_v27 = vpop.permute.xlu1 %1149  ;;  %v2549_v61 = vpop.permute.xlu0 %1160 }
 0x201   : > { %v2551_v28 = vpop.permute.xlu1 %1171  ;;  %v2553_v63 = vpop.permute.xlu0 %1182 }
 0x205   : > { %v1194_v14 = vpop.permute.xlu1 %1193  ;;  %v1205_v36 = vpop.permute.xlu0 %1204 }
 0x206   : > { %v2556_v38 = vmul.f32 %v1194_v14, %v2455_v41  ;;  %v2559_v40 = vmul.f32 %v1194_v14, %v2473_v29  ;;  %v2562_v45 = vmul.f32 %v1205_v36, %v2455_v41  ;;  %v2565_v42 = vmul.f32 %v1205_v36, %v2473_v29 }
 0x209   : > { %v1216_v10 = vpop.permute.xlu1 %1215  ;;  %v1227_v48 = vpop.permute.xlu0 %1226 }
 0x20a   : > { %v2568_v9 = vmul.f32 %v1216_v10, %v2464_v15  ;;  %v2571_v11 = vmul.f32 %v1216_v10, %v2485_v2  ;;  %v2574_v25 = vmul.f32 %v1227_v48, %v2464_v15  ;;  %v2577_v52 = vmul.f32 %v1227_v48, %v2485_v2 }
 0x20d   : > { %v2579_v53 = vpop.permute.xlu1 %1237  ;;  %v2581_v41 = vpop.permute.xlu0 %1257 }
 0x211   : > { %v2583_v7 = vpop.permute.xlu1 %1277  ;;  %v2585_v29 = vpop.permute.xlu0 %1297 }
 0x215   : > { %v2587_v34 = vpop.permute.xlu1 %1317  ;;  %v2589_v43 = vpop.permute.xlu0 %1328 }
 0x219   : > { %v2591_v54 = vpop.permute.xlu1 %1339  ;;  %v2593_v58 = vpop.permute.xlu0 %1350 }
 0x21d   : > { %v2595_v15 = vpop.permute.xlu1 %1378  ;;  %v2597_v13 = vpop.permute.xlu0 %1389 }
 0x221   : > { %v2599_v2 = vpop.permute.xlu1 %1400  ;;  %v2601_v44 = vpop.permute.xlu0 %1411 }
 0x222   : > { %2827 = vst [vmem:[#allocation16_spill] sm:$0xff] %v2599_v2  ;;  %2828 = vst [vmem:[#allocation17_spill] sm:$0xff] %v2601_v44 }
 0x225   : > { %v2603_v32 = vpop.permute.xlu1 %1438  ;;  %v2605_v0 = vpop.permute.xlu0 %1449 }
 0x226   : > { %2829 = vst [vmem:[#allocation18_spill] sm:$0xff] %v2603_v32  ;;  %2830 = vst [vmem:[#allocation19_spill] sm:$0xff] %v2605_v0 }
 0x229   : > { %v2607_v22 = vpop.permute.xlu1 %1460  ;;  %v2609_v4 = vpop.permute.xlu0 %1471 }
 0x22a   : > { %2831 = vst [vmem:[#allocation20_spill] sm:$0xff] %v2607_v22  ;;  %2832 = vst [vmem:[#allocation21_spill] sm:$0xff] %v2609_v4  ;;  %v2836_v4 = vlaneseq }
 0x22c   : > { %v1243_v0 = vshrl.u32 %v2836_v4, 7 }
 0x22d   : > { %v2611_v1 = vpop.permute.xlu1 %1498  ;;  %v2613_v39 = vpop.permute.xlu0 %1509 }
 0x22e   : > { %2833 = vst [vmem:[#allocation22_spill] sm:$0xff] %v2611_v1  ;;  %2834 = vst [vmem:[#allocation23_spill] sm:$0xff] %v2613_v39  ;;  %v1241_v1 = vunpack.c.0.s8 %v1240_v24 }
 0x23d   : > { %v2615_v18 = vpop.permute.xlu1 %1357  ;;  %v1006_v50 = vpop.permute.xlu0 %1005 }
 0x23e   : > { %v1020_v17 = vsel %vm1013_vm14, 0.0, %v1006_v50 }
 0x23f   : > { %v1028_v55 = vmul.f32 %v2515_v3, %v1020_v17  ;;  %v1039_v56 = vmul.f32 %v2513_v47, %v1020_v17 }
 0x241   : > { %v2618_v51 = vpop.permute.xlu1 %1361  ;;  %v1010_v16 = vpop.permute.xlu0 %1009 }
 0x242   : > { %2835 = vst [vmem:[#allocation24_spill] sm:$0xff] %v2618_v51  ;;  %v1021_v59 = vsel %vm1013_vm14, 0.0, %v1010_v16 }
 0x243   : > { %v1050_v19 = vmul.f32 %v2517_v49, %v1021_v59  ;;  %v1061_v21 = vmul.f32 %v2519_v37, %v1021_v59 }
 0x245   : > { %v1052_v14 = vadd.f32 %v1050_v19, %v1028_v55  ;;  %v1063_v36 = vadd.f32 %v1061_v21, %v1039_v56  ;;  %v1008_v10 = vpop.permute.xlu1 %1007  ;;  %v1132_v17 = vpop.permute.xlu0 %1131 }
 0x246   : > { %v1014_v22 = vsel %vm1013_vm14, %v1006_v50, %v1008_v10 }
 0x247   : > { %v1090_v48 = vadd.f32 %v1088_v57, %v1052_v14  ;;  %v1101_v39 = vadd.f32 %v1099_v20, %v1063_v36  ;;  %v1029_v59 = vmul.f32 %v2515_v3, %v1014_v22  ;;  %v1040_v23 = vmul.f32 %v2513_v47, %v1014_v22 }
 0x248   : > { %v1244_v20 = vsub.s32 %v1241_v1, %v1243_v0 }
 0x249   : > { %v1012_v32 = vpop.permute.xlu1 %1011  ;;  %v1112_v44 = vadd.f32 %v1110_v31, %v1090_v48  ;;  %v1123_v2 = vadd.f32 %v1121_v26, %v1101_v39  ;;  %v1136_v22 = vpop.permute.xlu0 %1135 }
 0x24a   : > { %v1015_v51 = vsel %vm1013_vm14, %v1010_v16, %v1012_v32  ;;  %v1245_v47 = vrot.slane %v2579_v53, %v1244_v20 }
 0x24b   : > { %v1051_v55 = vmul.f32 %v2517_v49, %v1015_v51  ;;  %v1062_v57 = vmul.f32 %v2519_v37, %v1015_v51 }
 0x24d   : > { %v1053_v56 = vadd.f32 %v1051_v55, %v1029_v59  ;;  %v1064_v19 = vadd.f32 %v1062_v57, %v1040_v23  ;;  %v1130_v4 = vpop.permute.xlu1 %1129  ;;  %v1360_v59 = vpop.permute.xlu0 %1359 }
 0x24e   : > { %v1137_v50 = vsel %vm1013_vm14, %v1130_v4, %v1132_v17  ;;  %v1143_v31 = vsel %vm1013_vm14, 0.0, %v1130_v4 }
 0x24f   : > { %v1091_v26 = vadd.f32 %v2534_v60, %v1053_v56  ;;  %v1102_v32 = vadd.f32 %v2536_v8, %v1064_v19  ;;  %v1152_v3 = vmul.f32 %v2547_v27, %v1143_v31  ;;  %v1163_v49 = vmul.f32 %v2549_v61, %v1143_v31 }
 0x250   : > { %v1153_v1 = vmul.f32 %v2547_v27, %v1137_v50  ;;  %v1164_v39 = vmul.f32 %v2549_v61, %v1137_v50  ;;  %v1265_v60 = vrot.slane %v2581_v41, %v1244_v20  ;;  %v1247_v41 = vmul.f32 %v1245_v47, %v2062_v5 }
 0x251   : > { %v1113_v37 = vadd.f32 %v2543_v12, %v1091_v26  ;;  %v1124_v0 = vadd.f32 %v2545_v33, %v1102_v32  ;;  %v1134_v51 = vpop.permute.xlu1 %1133  ;;  %v1154_v16 = vadd.f32 %v1152_v3, %v1112_v44  ;;  %v1285_v33 = vrot.slane %v2583_v7, %v1244_v20 }
 0x252   : > { %v1138_v8 = vsel %vm1013_vm14, %v1134_v51, %v1136_v22  ;;  %v1144_v21 = vsel %vm1013_vm14, 0.0, %v1134_v51  ;;  %v1165_v36 = vadd.f32 %v1163_v49, %v1123_v2  ;;  %v1305_v44 = vrot.slane %v2585_v29, %v1244_v20 }
 0x253   : > { %v1155_v53 = vadd.f32 %v1153_v1, %v1113_v37  ;;  %v1166_v24 = vadd.f32 %v1164_v39, %v1124_v0  ;;  %v1174_v14 = vmul.f32 %v2551_v28, %v1144_v21  ;;  %v1175_v12 = vmul.f32 %v2551_v28, %v1138_v8 }
 0x254   : > { %v1185_v27 = vmul.f32 %v2553_v63, %v1144_v21  ;;  %v1186_v61 = vmul.f32 %v2553_v63, %v1138_v8  ;;  %v1267_v17 = vmul.f32 %v1265_v60, %v2062_v5  ;;  %v1287_v2 = vmul.f32 %v1285_v33, %v2064_v6 }
 0x255   : > { %v1176_v10 = vadd.f32 %v1174_v14, %v1154_v16  ;;  %v1177_v48 = vadd.f32 %v1175_v12, %v1155_v53  ;;  %v1249_v56 = vcombine.high %v1247_v41, %v1247_v41  ;;  %v1307_v29 = vmul.f32 %v1305_v44, %v2064_v6  ;;  %v1419_v60 = vpop.permute.xlu1 %1418 }
 0x256   : > { %v1187_v23 = vadd.f32 %v1185_v27, %v1165_v36  ;;  %v1188_v55 = vadd.f32 %v1186_v61, %v1166_v24  ;;  %v1269_v19 = vcombine.high %v1267_v17, %v1267_v17  ;;  %v1289_v31 = vcombine.high %v1287_v2, %v1287_v2  ;;  %v2837_v27 = vld [vmem:[#allocation24_spill] sm:$0xff] }
 0x257   : > { %v1198_v28 = vadd.f32 %v2556_v38, %v1176_v10  ;;  %v1199_v7 = vadd.f32 %v2559_v40, %v1177_v48  ;;  %v1309_v3 = vcombine.high %v1307_v29, %v1307_v29  ;;  %v1321_v49 = vmul.f32 %v2587_v34, %v2475_v46 }
 0x258   : > { %v1209_v57 = vadd.f32 %v2562_v45, %v1187_v23  ;;  %v1210_v63 = vadd.f32 %v2565_v42, %v1188_v55  ;;  %v1364_v45 = vpop.permute.xlu0 %1363  ;;  %v1320_v42 = vmul.f32 %v2587_v34, %v2494_v62  ;;  %v1353_v37 = vmul.f32 %v2593_v58, %v2501_v35 }
 0x259   : > { %v1220_v20 = vadd.f32 %v2568_v9, %v1198_v28  ;;  %v1221_v5 = vadd.f32 %v2571_v11, %v1199_v7  ;;  %v1331_v9 = vmul.f32 %v2589_v43, %v2494_v62  ;;  %v1332_v1 = vmul.f32 %v2589_v43, %v2475_v46 }
 0x25a   : > { %v1231_v4 = vadd.f32 %v2574_v25, %v1209_v57  ;;  %v1232_v38 = vadd.f32 %v2577_v52, %v1210_v63  ;;  %v1342_v25 = vmul.f32 %v2591_v54, %v2501_v35  ;;  %v1343_v21 = vmul.f32 %v2591_v54, %v2487_v30 }
 0x25b   : > { %v1251_v50 = vadd.f32 %v1247_v41, %v1220_v20  ;;  %v1252_v40 = vadd.f32 %v1249_v56, %v1221_v5  ;;  %v1354_v34 = vmul.f32 %v2593_v58, %v2487_v30  ;;  %v1366_v35 = vsel %vm1365_vm15, %v2615_v18, %v1360_v59 }
 0x25c   : > { %v1271_v26 = vadd.f32 %v1267_v17, %v1231_v4  ;;  %v1272_v32 = vadd.f32 %v1269_v19, %v1232_v38  ;;  %v1421_v16 = vpop.permute.xlu0 %1420  ;;  %v1372_v53 = vsel %vm1365_vm15, %v1360_v59, 0.0  ;;  %v1381_v12 = vmul.f32 %v2595_v15, %v1366_v35  ;;  %v2838_v17 = vld [vmem:[#allocation16_spill] sm:$0xff] }
 0x25d   : > { %v1291_v6 = vadd.f32 %v1287_v2, %v1251_v50  ;;  %v1292_v11 = vadd.f32 %v1289_v31, %v1252_v40  ;;  %v1382_v33 = vmul.f32 %v2595_v15, %v1372_v53  ;;  %v1392_v36 = vmul.f32 %v2597_v13, %v1366_v35  ;;  %v2839_v15 = vld [vmem:[#allocation17_spill] sm:$0xff]  ;;  %v2840_v50 = vld [vmem:[#allocation18_spill] sm:$0xff] }
 0x25e   : > { %v1311_v47 = vadd.f32 %v1307_v29, %v1271_v26  ;;  %v1312_v52 = vadd.f32 %v1309_v3, %v1272_v32  ;;  %v1393_v54 = vmul.f32 %v2597_v13, %v1372_v53  ;;  %v1367_v30 = vsel %vm1365_vm15, %v2837_v27, %v1364_v45  ;;  %v2841_v26 = vld [vmem:[#allocation20_spill] sm:$0xff]  ;;  %v2842_v3 = vld [vmem:[#allocation19_spill] sm:$0xff] }
 0x25f   : > { %v1322_v22 = vadd.f32 %v1320_v42, %v1291_v6  ;;  %v1323_v62 = vadd.f32 %v1321_v49, %v1292_v11  ;;  %v1373_v58 = vsel %vm1365_vm15, %v1364_v45, 0.0  ;;  %v1403_v59 = vmul.f32 %v2838_v17, %v1367_v30 }
 0x260   : > { %v1333_v0 = vadd.f32 %v1331_v9, %v1311_v47  ;;  %v1334_v8 = vadd.f32 %v1332_v1, %v1312_v52  ;;  %v1404_v23 = vmul.f32 %v2838_v17, %v1373_v58  ;;  %v1414_v55 = vmul.f32 %v2839_v15, %v1367_v30  ;;  %v2843_v9 = vld [vmem:[#allocation21_spill] sm:$0xff] }
 0x261   : > { %v1344_v39 = vadd.f32 %v1342_v25, %v1322_v22  ;;  %v1345_v24 = vadd.f32 %v1343_v21, %v1323_v62  ;;  %v1415_v28 = vmul.f32 %v2839_v15, %v1373_v58  ;;  %v1426_v13 = vsel %vm1365_vm15, %v1419_v60, %v1421_v16  ;;  %v2844_v22 = vld [vmem:[#allocation22_spill] sm:$0xff] }
 0x262   : > { %v1355_v51 = vadd.f32 %v1353_v37, %v1333_v0  ;;  %v1356_v14 = vadd.f32 %v1354_v34, %v1334_v8  ;;  %v1432_v7 = vsel %vm1365_vm15, %v1421_v16, 0.0  ;;  %v1441_v40 = vmul.f32 %v2840_v50, %v1426_v13 }
 0x263   : > { %v1383_v18 = vadd.f32 %v1381_v12, %v1344_v39  ;;  %v1384_v61 = vadd.f32 %v1382_v33, %v1345_v24  ;;  %v1442_v31 = vmul.f32 %v2840_v50, %v1432_v7  ;;  %v1452_v42 = vmul.f32 %v2842_v3, %v1426_v13 }
 0x264   : > { %v1394_v10 = vadd.f32 %v1392_v36, %v1355_v51  ;;  %v1395_v48 = vadd.f32 %v1393_v54, %v1356_v14  ;;  %v1453_v6 = vmul.f32 %v2842_v3, %v1432_v7  ;;  %v2845_v51 = vld [vmem:[#allocation23_spill] sm:$0xff] }
 0x265   : > { %v1405_v63 = vadd.f32 %v1403_v59, %v1383_v18  ;;  %v1406_v56 = vadd.f32 %v1404_v23, %v1384_v61 }
 0x266   : > { %v1521_v46 = vpop.permute.xlu1 %1520  ;;  %v2683_v43 = vpop.permute.xlu0 %1531  ;;  %v1416_v5 = vadd.f32 %v1414_v55, %v1394_v10  ;;  %v1417_v19 = vadd.f32 %v1415_v28, %v1395_v48 }
 0x267   : > { %v1443_v25 = vadd.f32 %v1441_v40, %v1405_v63  ;;  %v1444_v52 = vadd.f32 %v1442_v31, %v1406_v56 }
 0x268   : > { %v1454_v39 = vadd.f32 %v1452_v42, %v1416_v5  ;;  %v1455_v62 = vadd.f32 %v1453_v6, %v1417_v19 }
 0x26a   : > { %v1423_v41 = vpop.permute.xlu1 %1422  ;;  %v1425_v44 = vpop.permute.xlu0 %1424 }
 0x26b   : > { %v1427_v2 = vsel %vm1365_vm15, %v1423_v41, %v1425_v44  ;;  %v1433_v57 = vsel %vm1365_vm15, %v1425_v44, 0.0 }
 0x26c   : > { %v1463_v32 = vmul.f32 %v2841_v26, %v1427_v2  ;;  %v1464_v45 = vmul.f32 %v2841_v26, %v1433_v57  ;;  %v1474_v11 = vmul.f32 %v2843_v9, %v1427_v2  ;;  %v1475_v47 = vmul.f32 %v2843_v9, %v1433_v57 }
 0x26e   : > { %v1479_v29 = vpop.permute.xlu1 %1478  ;;  %v1481_v20 = vpop.permute.xlu0 %1480  ;;  %v1465_v8 = vadd.f32 %v1463_v32, %v1443_v25  ;;  %v1466_v21 = vadd.f32 %v1464_v45, %v1444_v52  ;;  %v1476_v34 = vadd.f32 %v1474_v11, %v1454_v39  ;;  %v1477_v35 = vadd.f32 %v1475_v47, %v1455_v62 }
 0x26f   : > { %v1486_v4 = vsel %vm1365_vm15, %v1479_v29, %v1481_v20  ;;  %v1492_v38 = vsel %vm1365_vm15, %v1481_v20, 0.0 }
 0x270   : > { %v1501_v49 = vmul.f32 %v2844_v22, %v1486_v4  ;;  %v1502_v37 = vmul.f32 %v2844_v22, %v1492_v38  ;;  %v1512_v60 = vmul.f32 %v2845_v51, %v1486_v4  ;;  %v1513_v16 = vmul.f32 %v2845_v51, %v1492_v38 }
 0x272   : > { %v1542_v0 = vpop.permute.xlu1 %1541  ;;  %v1556_v1 = vpop.permute.xlu0 %1555  ;;  %v1503_v53 = vadd.f32 %v1501_v49, %v1465_v8  ;;  %v1504_v24 = vadd.f32 %v1502_v37, %v1466_v21  ;;  %v1514_v33 = vadd.f32 %v1512_v60, %v1476_v34  ;;  %v1515_v36 = vadd.f32 %v1513_v16, %v1477_v35 }
 0x276   : > { %v1483_v14 = vpop.permute.xlu1 %1482  ;;  %v1485_v12 = vpop.permute.xlu0 %1484 }
 0x277   : > { %v1487_v54 = vsel %vm1365_vm15, %v1483_v14, %v1485_v12  ;;  %v1493_v27 = vsel %vm1365_vm15, %v1485_v12, 0.0 }
 0x278   : > { %v1523_v30 = vmul.f32 %v1521_v46, %v1487_v54  ;;  %v1524_v58 = vmul.f32 %v1521_v46, %v1493_v27  ;;  %v1534_v18 = vmul.f32 %v2683_v43, %v1487_v54  ;;  %v1535_v61 = vmul.f32 %v2683_v43, %v1493_v27 }
 0x27a   : > { %v1525_v41 = vadd.f32 %v1523_v30, %v1503_v53  ;;  %v1526_v44 = vadd.f32 %v1524_v58, %v1504_v24  ;;  %v1536_v10 = vadd.f32 %v1534_v18, %v1514_v33  ;;  %v1537_v48 = vadd.f32 %v1535_v61, %v1515_v36 }
 0x27c   : > { %v1544_v17 = vadd.f32 %v1542_v0, %v1525_v41  ;;  %v1545_v59 = vadd.f32 %v1542_v0, %v1526_v44  ;;  %v1558_v23 = vadd.f32 %v1556_v1, %v1536_v10  ;;  %v1559_v15 = vadd.f32 %v1556_v1, %v1537_v48 }
 0x27e   : > { %v1548_v55 = vcombine.low %v1544_v17, %v1545_v59  ;;  %v1562_v28 = vcombine.low %v1558_v23, %v1559_v15 }
 0x280   : > { %1550 = vst [vmem:[%s2066_s21] sm:$0xff] %v1548_v55  ;;  %1786 = vst [vmem:[%s2066_s21 + $0x8] sm:$0xff] %v1562_v28 }
 0x281 PF: > { %s1794_s7 = sshll.u32 %s1939_s15, 8  ;;  %s1582_s11 = sshll.u32 %s2066_s21, 4  ;;  %s2727_s11 = int_to_ptr.vmem [resolvable:$true] %s1582_s11 }
 0x282   : > { %s2724_s10 = scalar_lea.hbm %s2780_s3, %s1794_s7  ;;  %s2731_s18 = scalar_lea.sflag [#allocation3], %s231_s26 }
 0x283   : > { %s1869_s19 = scalar_lea.vmem %s2727_s11, 256  ;;  %s1961_s15 = smov [#allocation2]  }
 0x284   : > { %p1870_p0 = scmp.ne.s32.totalorder %s2727_s11, %s1869_s19  ;;  %s1873_s23 = sshll.u32 %s1961_s15, 4  ;;  %s1874_s23 = int_to_ptr.vmem [resolvable:$false] %s1873_s23 }
 0x285   : > { %s1875_s27 = scalar_lea.vmem %s1874_s23, 512  ;;  %p1876_p3 = scmp.lt.s32.totalorder %s2727_s11, %s1874_s23 }
 0x286   : > { %p1871_p1 = pnand %p1870_p0, %p2024_p4  ;;  %p1877_p5 = scmp.lt.s32.totalorder %s1875_s27, %s1869_s19 }
 0x288   : > { %p1872_p2 = pneg %p1871_p1  ;;  %p1878_p6 = por %p1877_p5, %p1876_p3 }
 0x28a   : > { %p1879_p7 = pnand %p1878_p6, %p1872_p2 }
 0x28c   : > { %1882 = shalt.err (!%p1879_p7)
}
 0x28d   : > { %s1883_s26 = scalar_lea.hbm %s2724_s10, 256  ;;  %s1887_s29 = scalar_lea.hbm %s2780_s3, 512 }
 0x28e   : > { %p1884_p9 = scmp.ne.s32.totalorder %s2724_s10, %s1883_s26  ;;  %p1888_p12 = scmp.lt.u32.totalorder %s2724_s10, %s2780_s3 }
 0x28f   : > { %p1889_p13 = scmp.lt.u32.totalorder %s1887_s29, %s1883_s26  ;;  %p1891_p1 = scmp.lt.u32.totalorder %s1883_s26, %s2724_s10 }
 0x290   : > { %p1885_p10 = pnand %p1884_p9, %p2024_p4 }
 0x291   : > { %p1890_p0 = por %p1889_p13, %p1888_p12 }
 0x292   : > { %p1886_p11 = pneg %p1885_p10 }
 0x293   : > { %p1892_p2 = por %p1891_p1, %p1890_p0 }
 0x295   : > { %p1893_p3 = pnand %p1892_p2, %p1886_p11 }
 0x297   : > { %1896 = shalt.err (!%p1893_p3)
}
 0x298   : > { %s1962_s5 = smov 128   ;;  %s1963_s6 = smov 8  }
 0x299   : > { %1796 = dma.vmem_to_hbm [thread:$0]  (%p2024_p4), %s2727_s11, 256, %s2724_s10, %s2731_s18, %s1962_s5, %s1962_s5, %s1963_s6  }
 0x29a PF: > { %p1802_p5 = scmp.ge.s32.totalorder %s1947_s17, 2  ;;  %s1597_s7 = sand.u32 1, %s1927_s12  }
 0x29b   : > { %s1598_s8 = scalar_lea.sflag [#allocation3], %s1597_s7 }
 0x29c   : > { %p1799_p6 = pnand %p1802_p5, %p2031_p8 }
 0x29e   : > { %1922 = dma.done.wait (!%p1799_p6), %s1598_s8, 256  }
 0x29f   : > { %1924 = vsyncadd (!%p1799_p6), %s1598_s8, 4294967040  ;;  %s16_s17 = sadd.s32 1, %s1947_s17   ;;  %s2846_s12 = smov %s1931_s13 }
 0x2a0   : > { %p13_p7 = scmp.ge.s32.totalorder %s16_s17, 4   ;;  %s2847_s13 = smov %s1935_s14 }
 0x2a1   : > { %s2848_s14 = smov %s2037_s25  ;;  %s2849_s15 = smov %s1943_s16 }
 0x2a2   : > { %s2850_s16 = smov %s2852_s20  ;;  %15 = sbr.rel (!%p13_p7) target bundleno = 4 (0x4), region = 155 }
 0x2a9   :  { %1603 = vsyncpa [#allocation3], 1 }
 0x2aa   :  { %1605 = vsyncpa [#allocation3 + $0x1], 1 }

</bundles_post_ra>
